<compile_context>
chip_gen: v6e
topology: v6e:2x2x1
jax: 0.10.0
libtpu: 0.0.40
codegen_flags: <defaults>
</compile_context>

<pallas_src>
import jax
import jax.numpy as jnp
from jax.experimental import pallas as pl
from jax.experimental.pallas import tpu as pltpu


def aff_kernel(alphas_ref, x_ref, wl1_ref, bl1_ref, wl2_ref, bl2_ref,
               wg1_ref, bg1_ref, wg2_ref, bg2_ref, out_ref):
    """One batch element per grid step.

    alphas_ref: SMEM (2,)      [alpha_glo, alpha_loc] PReLU slopes
    x_ref     : (1, C, HW)     input tile, channels on sublanes, spatial on lanes
    wl1/wl2   : (C, C)         loc 1x1 convs with BN folded in
    bl1/bl2   : (C, 1)         loc folded biases (broadcast along lanes)
    wg1       : (Cr, C)        glo squeeze 1x1 conv (bias bg1: (Cr,1))
    wg2       : (C, Cr)        glo excite 1x1 conv with BN1/BN2 folded (bias bg2: (C,1))
    out_ref   : (1, C, HW)
    """
    xf = x_ref[0]                      # (C, HW)  f32
    alpha_g = alphas_ref[0]
    alpha_l = alphas_ref[1]

    # ---- loc branch: conv1x1 -> (BN folded) -> PReLU -> conv1x1 -> (BN folded) ----
    h = jnp.dot(wl1_ref[...], xf, preferred_element_type=jnp.float32) + bl1_ref[...]
    h = jnp.where(h >= 0.0, h, alpha_l * h)                                   # PReLU
    loc = jnp.dot(wl2_ref[...], h, preferred_element_type=jnp.float32) + bl2_ref[...]

    # ---- glo branch: global avg pool -> conv1x1 -> PReLU -> (BN/conv/BN folded) ----
    g = jnp.mean(xf, axis=1, keepdims=True)                                   # (C, 1)
    hg = jnp.dot(wg1_ref[...], g, preferred_element_type=jnp.float32) + bg1_ref[...]
    hg = jnp.where(hg >= 0.0, hg, alpha_g * hg)                               # PReLU
    glo = jnp.dot(wg2_ref[...], hg, preferred_element_type=jnp.float32) + bg2_ref[...]

    # ---- fuse: out = x * sigmoid(glo + loc) ----
    y = jax.nn.sigmoid(glo + loc)      # glo (C,1) broadcasts along lanes
    out_ref[0] = (xf * y).astype(out_ref.dtype)


def aff_forward(x, p, eps=1e-5):
    """x: (B, C, H, W) float32 (PyTorch NCHW).  Returns (B, C, H, W)."""
    B, C, H, W = x.shape
    HW = H * W
    Cr = p["wg1"].shape[0]

    def bn_fold(gamma, beta, mean, var):
        s = gamma * jax.lax.rsqrt(var + eps)
        return s, beta - s * mean

    # loc: BN directly follows each conv -> fold into that conv.
    s, t = bn_fold(p["l1_gamma"], p["l1_beta"], p["l1_mean"], p["l1_var"])
    wl1 = s[:, None] * p["wl1"]
    bl1 = s * p["bl1"] + t
    s, t = bn_fold(p["l2_gamma"], p["l2_beta"], p["l2_mean"], p["l2_var"])
    wl2 = s[:, None] * p["wl2"]
    bl2 = s * p["bl2"] + t

    # glo: PReLU follows conv1 directly, so conv1 stays as-is; fold BN1 (input
    # side) and BN2 (output side) into conv2.
    s1, t1 = bn_fold(p["g1_gamma"], p["g1_beta"], p["g1_mean"], p["g1_var"])
    s2, t2 = bn_fold(p["g2_gamma"], p["g2_beta"], p["g2_mean"], p["g2_var"])
    wg2 = s2[:, None] * p["wg2"] * s1[None, :]
    bg2 = s2 * (p["wg2"] @ t1 + p["bg2"]) + t2

    alphas = jnp.stack([jnp.asarray(p["alpha_g"], jnp.float32),
                        jnp.asarray(p["alpha_l"], jnp.float32)])

    xf = x.reshape(B, C, HW)           # metadata-only reshape (trailing dims)

    out = pl.pallas_call(
        aff_kernel,
        out_shape=jax.ShapeDtypeStruct((B, C, HW), x.dtype),
        grid_spec=pltpu.PrefetchScalarGridSpec(
            num_scalar_prefetch=0,
            grid=(B,),
            in_specs=[
                pl.BlockSpec(memory_space=pltpu.MemorySpace.SMEM),  # alphas
                pl.BlockSpec((1, C, HW), lambda b: (b, 0, 0)),      # x
                pl.BlockSpec((C, C), lambda b: (0, 0)),             # wl1
                pl.BlockSpec((C, 1), lambda b: (0, 0)),             # bl1
                pl.BlockSpec((C, C), lambda b: (0, 0)),             # wl2
                pl.BlockSpec((C, 1), lambda b: (0, 0)),             # bl2
                pl.BlockSpec((Cr, C), lambda b: (0, 0)),            # wg1
                pl.BlockSpec((Cr, 1), lambda b: (0, 0)),            # bg1
                pl.BlockSpec((C, Cr), lambda b: (0, 0)),            # wg2
                pl.BlockSpec((C, 1), lambda b: (0, 0)),             # bg2
            ],
            out_specs=pl.BlockSpec((1, C, HW), lambda b: (b, 0, 0)),
        ),
        compiler_params=pltpu.CompilerParams(
            dimension_semantics=("parallel",)),   # batch is independent -> v7x megacore
    )(alphas, xf,
      wl1, bl1.reshape(C, 1), wl2, bl2.reshape(C, 1),
      p["wg1"], p["bg1"].reshape(Cr, 1), wg2, bg2.reshape(C, 1))

    return out.reshape(B, C, H, W)


def aff_reference(x, p, eps=1e-5):
    """Pure-JAX reference mirroring the PyTorch module (eval-mode BN)."""
    def conv1x1(v, w, b):
        return jnp.einsum("oc,bchw->bohw", w, v) + b[None, :, None, None]

    def bn(v, gamma, beta, mean, var):
        inv = gamma / jnp.sqrt(var + eps)
        return (v - mean[None, :, None, None]) * inv[None, :, None, None] \
            + beta[None, :, None, None]

    def prelu(v, a):
        return jnp.where(v >= 0, v, a * v)

    g = jnp.mean(x, axis=(2, 3), keepdims=True)
    g = conv1x1(g, p["wg1"], p["bg1"])
    g = prelu(g, p["alpha_g"])
    g = bn(g, p["g1_gamma"], p["g1_beta"], p["g1_mean"], p["g1_var"])
    g = conv1x1(g, p["wg2"], p["bg2"])
    a = bn(g, p["g2_gamma"], p["g2_beta"], p["g2_mean"], p["g2_var"])

    l = conv1x1(x, p["wl1"], p["bl1"])
    l = bn(l, p["l1_gamma"], p["l1_beta"], p["l1_mean"], p["l1_var"])
    l = prelu(l, p["alpha_l"])
    l = conv1x1(l, p["wl2"], p["bl2"])
    b = bn(l, p["l2_gamma"], p["l2_beta"], p["l2_mean"], p["l2_var"])

    return x * jax.nn.sigmoid(a + b)


if __name__ == "__main__":
    # Keep both sides at true f32 matmul precision so the comparison is tight.
    jax.config.update("jax_default_matmul_precision", "highest")

    # Module hyperparams: n_feats=32, reduction=4.
    B, C, H, W = 2, 32, 16, 16
    R = 4
    Cr = C // R

    keys = iter(jax.random.split(jax.random.PRNGKey(0), 32))

    def rand(shape, scale=1.0):
        return jax.random.normal(next(keys), shape, jnp.float32) * scale

    x = rand((B, C, H, W))

    params = dict(
        # glo branch
        wg1=rand((Cr, C), 0.1), bg1=rand((Cr,), 0.1),
        alpha_g=jnp.array(0.25, jnp.float32),
        g1_gamma=1.0 + rand((Cr,), 0.1), g1_beta=rand((Cr,), 0.1),
        g1_mean=rand((Cr,), 0.1), g1_var=1.0 + jnp.abs(rand((Cr,), 0.2)),
        wg2=rand((C, Cr), 0.1), bg2=rand((C,), 0.1),
        g2_gamma=1.0 + rand((C,), 0.1), g2_beta=rand((C,), 0.1),
        g2_mean=rand((C,), 0.1), g2_var=1.0 + jnp.abs(rand((C,), 0.2)),
        # loc branch
        wl1=rand((C, C), 0.1), bl1=rand((C,), 0.1),
        l1_gamma=1.0 + rand((C,), 0.1), l1_beta=rand((C,), 0.1),
        l1_mean=rand((C,), 0.1), l1_var=1.0 + jnp.abs(rand((C,), 0.2)),
        alpha_l=jnp.array(0.3, jnp.float32),
        wl2=rand((C, C), 0.1), bl2=rand((C,), 0.1),
        l2_gamma=1.0 + rand((C,), 0.1), l2_beta=rand((C,), 0.1),
        l2_mean=rand((C,), 0.1), l2_var=1.0 + jnp.abs(rand((C,), 0.2)),
    )

    out = jax.block_until_ready(aff_forward(x, params))
    ref = jax.block_until_ready(aff_reference(x, params))

    assert out.shape == (B, C, H, W)
    max_err = float(jnp.max(jnp.abs(out - ref)))
    assert jnp.allclose(out, ref, atol=1e-3, rtol=1e-3), max_err

    print("KERNEL_OK")
</pallas_src>

<mosaic_0001>
module attributes {stable_mosaic.version = 11 : i64} {
  func.func @aff_kernel(%arg0: i32, %arg1: memref<2xf32, #tpu.memory_space<smem>>, %arg2: memref<1x32x256xf32, #tpu.memory_space<vmem>>, %arg3: memref<32x32xf32, #tpu.memory_space<vmem>>, %arg4: memref<32x1xf32, #tpu.memory_space<vmem>>, %arg5: memref<32x32xf32, #tpu.memory_space<vmem>>, %arg6: memref<32x1xf32, #tpu.memory_space<vmem>>, %arg7: memref<8x32xf32, #tpu.memory_space<vmem>>, %arg8: memref<8x1xf32, #tpu.memory_space<vmem>>, %arg9: memref<32x8xf32, #tpu.memory_space<vmem>>, %arg10: memref<32x1xf32, #tpu.memory_space<vmem>>, %arg11: memref<1x32x256xf32, #tpu.memory_space<vmem>>) attributes {dimension_semantics = [#tpu.dimension_semantics<parallel>], iteration_bounds = array<i64: 2>, scalar_prefetch = 0 : i64, scratch_operands = 0 : i64, tpu.core_type = #tpu.core_type<tc>, window_params = [{transform_indices = @transform_0, window_bounds = array<i64: 2>}, {transform_indices = @transform_1, window_bounds = array<i64: 1, 32, 256>}, {pipeline_mode = #tpu.pipeline_mode<synchronous>, transform_indices = @transform_2, window_bounds = array<i64: 32, 32>}, {pipeline_mode = #tpu.pipeline_mode<synchronous>, transform_indices = @transform_3, window_bounds = array<i64: 32, 1>}, {pipeline_mode = #tpu.pipeline_mode<synchronous>, transform_indices = @transform_4, window_bounds = array<i64: 32, 32>}, {pipeline_mode = #tpu.pipeline_mode<synchronous>, transform_indices = @transform_5, window_bounds = array<i64: 32, 1>}, {pipeline_mode = #tpu.pipeline_mode<synchronous>, transform_indices = @transform_6, window_bounds = array<i64: 8, 32>}, {pipeline_mode = #tpu.pipeline_mode<synchronous>, transform_indices = @transform_7, window_bounds = array<i64: 8, 1>}, {pipeline_mode = #tpu.pipeline_mode<synchronous>, transform_indices = @transform_8, window_bounds = array<i64: 32, 8>}, {pipeline_mode = #tpu.pipeline_mode<synchronous>, transform_indices = @transform_9, window_bounds = array<i64: 32, 1>}, {transform_indices = @transform_10, window_bounds = array<i64: 1, 32, 256>}]} {
    %c0 = arith.constant 0 : index
    %c0_0 = arith.constant 0 : index
    %c0_1 = arith.constant 0 : index
    %0 = vector.load %arg2[%c0, %c0_0, %c0_1] : memref<1x32x256xf32, #tpu.memory_space<vmem>>, vector<1x32x256xf32>
    %1 = vector.shape_cast %0 : vector<1x32x256xf32> to vector<32x256xf32>
    %c0_2 = arith.constant 0 : index
    %2 = memref.load %arg1[%c0_2] : memref<2xf32, #tpu.memory_space<smem>>
    %c1 = arith.constant 1 : index
    %3 = memref.load %arg1[%c1] : memref<2xf32, #tpu.memory_space<smem>>
    %c0_3 = arith.constant 0 : index
    %c0_4 = arith.constant 0 : index
    %4 = vector.load %arg3[%c0_3, %c0_4] : memref<32x32xf32, #tpu.memory_space<vmem>>, vector<32x32xf32>
    %cst = arith.constant dense<0.000000e+00> : vector<32x256xf32>
    %5 = tpu.matmul %4, %1, %cst {dimension_numbers = #tpu.dot_dimension_numbers<[1], [0], [0], [1], [0, 0, 1, 1], [], []>, precision = #tpu.contract_precision<fp32>} : vector<32x32xf32>, vector<32x256xf32>, vector<32x256xf32> -> vector<32x256xf32>
    %c0_5 = arith.constant 0 : index
    %c0_6 = arith.constant 0 : index
    %6 = vector.load %arg4[%c0_5, %c0_6] : memref<32x1xf32, #tpu.memory_space<vmem>>, vector<32x1xf32>
    %7 = vector.broadcast %6 : vector<32x1xf32> to vector<32x256xf32>
    %8 = arith.addf %5, %7 : vector<32x256xf32>
    %cst_7 = arith.constant 0.000000e+00 : f32
    %9 = vector.broadcast %cst_7 : f32 to vector<32x256xf32>
    %10 = arith.cmpf oge, %8, %9 : vector<32x256xf32>
    %11 = vector.broadcast %3 : f32 to vector<32x256xf32>
    %12 = arith.mulf %11, %8 : vector<32x256xf32>
    %13 = arith.select %10, %8, %12 : vector<32x256xi1>, vector<32x256xf32>
    %c0_8 = arith.constant 0 : index
    %c0_9 = arith.constant 0 : index
    %14 = vector.load %arg5[%c0_8, %c0_9] : memref<32x32xf32, #tpu.memory_space<vmem>>, vector<32x32xf32>
    %cst_10 = arith.constant dense<0.000000e+00> : vector<32x256xf32>
    %15 = tpu.matmul %14, %13, %cst_10 {dimension_numbers = #tpu.dot_dimension_numbers<[1], [0], [0], [1], [0, 0, 1, 1], [], []>, precision = #tpu.contract_precision<fp32>} : vector<32x32xf32>, vector<32x256xf32>, vector<32x256xf32> -> vector<32x256xf32>
    %c0_11 = arith.constant 0 : index
    %c0_12 = arith.constant 0 : index
    %16 = vector.load %arg6[%c0_11, %c0_12] : memref<32x1xf32, #tpu.memory_space<vmem>>, vector<32x1xf32>
    %17 = vector.broadcast %16 : vector<32x1xf32> to vector<32x256xf32>
    %18 = arith.addf %15, %17 : vector<32x256xf32>
    %cst_13 = arith.constant dense<0.000000e+00> : vector<32xf32>
    %19 = vector.multi_reduction <add>, %1, %cst_13 [1] : vector<32x256xf32> to vector<32xf32>
    %20 = vector.shape_cast %19 : vector<32xf32> to vector<32x1xf32>
    %cst_14 = arith.constant 2.560000e+02 : f32
    %21 = vector.broadcast %cst_14 : f32 to vector<32x1xf32>
    %22 = arith.divf %20, %21 : vector<32x1xf32>
    %c0_15 = arith.constant 0 : index
    %c0_16 = arith.constant 0 : index
    %23 = vector.load %arg7[%c0_15, %c0_16] : memref<8x32xf32, #tpu.memory_space<vmem>>, vector<8x32xf32>
    %cst_17 = arith.constant dense<0.000000e+00> : vector<8x1xf32>
    %24 = tpu.matmul %23, %22, %cst_17 {dimension_numbers = #tpu.dot_dimension_numbers<[1], [0], [0], [1], [0, 0, 1, 1], [], []>, precision = #tpu.contract_precision<fp32>} : vector<8x32xf32>, vector<32x1xf32>, vector<8x1xf32> -> vector<8x1xf32>
    %c0_18 = arith.constant 0 : index
    %c0_19 = arith.constant 0 : index
    %25 = vector.load %arg8[%c0_18, %c0_19] : memref<8x1xf32, #tpu.memory_space<vmem>>, vector<8x1xf32>
    %26 = arith.addf %24, %25 : vector<8x1xf32>
    %cst_20 = arith.constant 0.000000e+00 : f32
    %27 = vector.broadcast %cst_20 : f32 to vector<8x1xf32>
    %28 = arith.cmpf oge, %26, %27 : vector<8x1xf32>
    %29 = vector.broadcast %2 : f32 to vector<8x1xf32>
    %30 = arith.mulf %29, %26 : vector<8x1xf32>
    %31 = arith.select %28, %26, %30 : vector<8x1xi1>, vector<8x1xf32>
    %c0_21 = arith.constant 0 : index
    %c0_22 = arith.constant 0 : index
    %32 = vector.load %arg9[%c0_21, %c0_22] : memref<32x8xf32, #tpu.memory_space<vmem>>, vector<32x8xf32>
    %cst_23 = arith.constant dense<0.000000e+00> : vector<32x1xf32>
    %33 = tpu.matmul %32, %31, %cst_23 {dimension_numbers = #tpu.dot_dimension_numbers<[1], [0], [0], [1], [0, 0, 1, 1], [], []>, precision = #tpu.contract_precision<fp32>} : vector<32x8xf32>, vector<8x1xf32>, vector<32x1xf32> -> vector<32x1xf32>
    %c0_24 = arith.constant 0 : index
    %c0_25 = arith.constant 0 : index
    %34 = vector.load %arg10[%c0_24, %c0_25] : memref<32x1xf32, #tpu.memory_space<vmem>>, vector<32x1xf32>
    %35 = arith.addf %33, %34 : vector<32x1xf32>
    %36 = vector.broadcast %35 : vector<32x1xf32> to vector<32x256xf32>
    %37 = arith.addf %36, %18 : vector<32x256xf32>
    %38 = arith.negf %37 : vector<32x256xf32>
    %39 = math.exp %38 : vector<32x256xf32>
    %cst_26 = arith.constant 1.000000e+00 : f32
    %40 = vector.broadcast %cst_26 : f32 to vector<32x256xf32>
    %41 = arith.addf %40, %39 : vector<32x256xf32>
    %42 = arith.divf %40, %41 : vector<32x256xf32>
    %43 = arith.mulf %1, %42 : vector<32x256xf32>
    %c0_27 = arith.constant 0 : index
    %c0_28 = arith.constant 0 : index
    %c0_29 = arith.constant 0 : index
    %44 = vector.load %arg11[%c0_27, %c0_28, %c0_29] : memref<1x32x256xf32, #tpu.memory_space<vmem>>, vector<1x32x256xf32>
    %45 = vector.shape_cast %44 : vector<1x32x256xf32> to vector<32x256xf32>
    %46 = vector.shape_cast %43 : vector<32x256xf32> to vector<1x32x256xf32>
    tpu.vector_store %arg11[%c0_27, %c0_28, %c0_29], %46 {strides = array<i32>} : memref<1x32x256xf32, #tpu.memory_space<vmem>>, vector<1x32x256xf32>,
    return
  }
  func.func @transform_0(%arg0: i32) -> i32 {
    %c0_i32 = arith.constant 0 : i32
    %c0_i32_0 = arith.constant 0 : i32
    return %c0_i32 : i32
  }
  func.func @transform_1(%arg0: i32) -> (i32, i32, i32) {
    %c0_i32 = arith.constant 0 : i32
    %c0_i32_0 = arith.constant 0 : i32
    %c0_i32_1 = arith.constant 0 : i32
    return %arg0, %c0_i32, %c0_i32_0 : i32, i32, i32
  }
  func.func @transform_2(%arg0: i32) -> (i32, i32) {
    %c0_i32 = arith.constant 0 : i32
    %c0_i32_0 = arith.constant 0 : i32
    %c0_i32_1 = arith.constant 0 : i32
    return %c0_i32, %c0_i32_0 : i32, i32
  }
  func.func @transform_3(%arg0: i32) -> (i32, i32) {
    %c0_i32 = arith.constant 0 : i32
    %c0_i32_0 = arith.constant 0 : i32
    %c0_i32_1 = arith.constant 0 : i32
    return %c0_i32, %c0_i32_0 : i32, i32
  }
  func.func @transform_4(%arg0: i32) -> (i32, i32) {
    %c0_i32 = arith.constant 0 : i32
    %c0_i32_0 = arith.constant 0 : i32
    %c0_i32_1 = arith.constant 0 : i32
    return %c0_i32, %c0_i32_0 : i32, i32
  }
  func.func @transform_5(%arg0: i32) -> (i32, i32) {
    %c0_i32 = arith.constant 0 : i32
    %c0_i32_0 = arith.constant 0 : i32
    %c0_i32_1 = arith.constant 0 : i32
    return %c0_i32, %c0_i32_0 : i32, i32
  }
  func.func @transform_6(%arg0: i32) -> (i32, i32) {
    %c0_i32 = arith.constant 0 : i32
    %c0_i32_0 = arith.constant 0 : i32
    %c0_i32_1 = arith.constant 0 : i32
    return %c0_i32, %c0_i32_0 : i32, i32
  }
  func.func @transform_7(%arg0: i32) -> (i32, i32) {
    %c0_i32 = arith.constant 0 : i32
    %c0_i32_0 = arith.constant 0 : i32
    %c0_i32_1 = arith.constant 0 : i32
    return %c0_i32, %c0_i32_0 : i32, i32
  }
  func.func @transform_8(%arg0: i32) -> (i32, i32) {
    %c0_i32 = arith.constant 0 : i32
    %c0_i32_0 = arith.constant 0 : i32
    %c0_i32_1 = arith.constant 0 : i32
    return %c0_i32, %c0_i32_0 : i32, i32
  }
  func.func @transform_9(%arg0: i32) -> (i32, i32) {
    %c0_i32 = arith.constant 0 : i32
    %c0_i32_0 = arith.constant 0 : i32
    %c0_i32_1 = arith.constant 0 : i32
    return %c0_i32, %c0_i32_0 : i32, i32
  }
  func.func @transform_10(%arg0: i32) -> (i32, i32, i32) {
    %c0_i32 = arith.constant 0 : i32
    %c0_i32_0 = arith.constant 0 : i32
    %c0_i32_1 = arith.constant 0 : i32
    return %arg0, %c0_i32, %c0_i32_0 : i32, i32, i32
  }
}

</mosaic_0001>

<bundles_post_ra>
// kernel: tpu_custom_call.1
= control target key start
LH: loop header
LB: loop body
LE: loop exit
PB: predicated region body
PF: predicated region fallthrough
CT: control target
= control target key end

     0   :  { %15 = vsyncpa [#allocation5], 0  ;;  %s4614_s0 = inlined_call_operand.vmem [shape: f32[2], index: 0, kind: input, shape index: {}]   ;;  %s4615_s1 = inlined_call_operand.vmem [shape: f32[2,32,256], index: 1, kind: input, shape index: {}]   ;;  %s4616_s2 = inlined_call_operand.hbm [shape: f32[32,32], index: 2, kind: input, shape index: {}]   ;;  %s4617_s3 = inlined_call_operand.vmem [shape: f32[32,1], index: 3, kind: input, shape index: {}]   ;;  %s4618_s4 = inlined_call_operand.hbm [shape: f32[32,32], index: 4, kind: input, shape index: {}]   ;;  %s4619_s5 = inlined_call_operand.vmem [shape: f32[32,1], index: 5, kind: input, shape index: {}]   ;;  %s4620_s6 = inlined_call_operand.vmem [shape: f32[8,32], index: 6, kind: input, shape index: {}]   ;;  %s4621_s7 = inlined_call_operand.vmem [shape: f32[8,1], index: 7, kind: input, shape index: {}]   ;;  %s4622_s8 = inlined_call_operand.vmem [shape: f32[32,8], index: 8, kind: input, shape index: {}]   ;;  %s4623_s9 = inlined_call_operand.vmem [shape: f32[32,1], index: 9, kind: input, shape index: {}]   ;;  %s4624_s10 = inlined_call_operand.hbm [shape: f32[2,32,256], index: 10, kind: output, shape index: {}]  }
   0x1   :  { %16 = vsyncpa [#allocation3], 0 }
   0x2   :  { %17 = vsyncpa [#allocation8], 0 }
   0x3   :  { %18 = vsyncpa [#allocation4], 0 }
   0x4   :  { %20 = vsyncpa [#allocation4 + $0x1], 0  ;;  %s3736_s13 = smov 0   ;;  %s3738_s14 = smov 0  }
   0x5   :  { %s3740_s15 = smov 0   ;;  %s3742_s16 = smov 0  }
   0x6 LB: > { %s3757_s17 = sadd.s32 4294967295, %s3668_s16   ;;  %s3207_s18 = sadd.s32 4294967294, %s3668_s16   ;;  %s3668_s16 = sphi %s3742_s16, %s4640_s16   ;;  %s3664_s15 = sphi %s3740_s15, %s4639_s15   ;;  %s3660_s14 = sphi %s3738_s14, %s4638_s14   ;;  %s3656_s13 = sphi %s3736_s13, %s4637_s13  }
   0x7   : > { %s3761_s19 = sadd.s32 1, %s3668_s16   ;;  %s248_s20 = sadd.s32 1, %s3664_s15 }
   0x8   : > { %s245_s21 = ssub.s32 %s3668_s16, %s3761_s19  ;;  %p258_p0 = scmp.ne.s32.totalorder %s3664_s15, %s3660_s14 }
   0x9   : > { %p246_p1 = scmp.eq.s32.totalorder %s245_s21, 0  ;;  %p259_p2 = scmp.eq.s32.totalorder %s3757_s17, 1 }
   0xa   : > { %p264_p3 = scmp.ne.s32.totalorder %s3660_s14, %s3656_s13  ;;  %p265_p4 = scmp.eq.s32.totalorder %s3207_s18, 1 }
   0xb   : > { %s3772_s22 = scalar_select %p246_p1, %s3664_s15, %s248_s20  }
   0xc   : > { %p3774_p5 = por %p259_p2, %p258_p0  ;;  %p3778_p6 = por %p265_p4, %p264_p3 }
   0xd   : > { %p3208_p7 = scmp.ge.s32.totalorder %s3668_s16, 1  ;;  %p272_p8 = scmp.lt.s32.totalorder %s3668_s16, 3 }
   0xe   : > { %s4627_s24 = scalar_select %p3778_p6, 1, 0 }
   0xf   : > { %p4625_p9 = scmp.eq.s32.totalorder %s3757_s17, 0  ;;  %p3785_p10 = pnand %p3208_p7, %p272_p8 }
  0x10   : > { %s285_s28 = sshll.u32 %s4614_s0, 4  ;;  %s3670_s29 = smov [#allocation6]   ;;  %s286_s28 = int_to_ptr.vmem [resolvable:$true] %s285_s28 }
  0x11   : > { %p3424_p11 = pneg %p3785_p10  ;;  %s295_s30 = sshll.u32 %s3670_s29, 4  ;;  %s3800_s30 = int_to_ptr.vmem [resolvable:$true] %s295_s30 }
  0x12   : > { %s3671_s12 = smov [#allocation7]   ;;  %s3529_s20 = scalar_lea.vmem %s286_s28, 16 }
  0x13   : > { %p3796_p12 = pnand %p4625_p9, %p3424_p11  ;;  %s311_s18 = sshll.u32 %s3671_s12, 4  ;;  %s312_s18 = int_to_ptr.vmem [resolvable:$true] %s311_s18 }
  0x14   : > { %p3530_p13 = scmp.ne.s32.totalorder %s286_s28, %s3529_s20  ;;  %p3537_p3 = scmp.lt.s32.totalorder %s286_s28, %s286_s28 }
  0x15   : > { %p3531_p0 = pneg %p3796_p12  ;;  %p3538_p4 = scmp.lt.s32.totalorder %s3529_s20, %s3529_s20 }
  0x17   : > { %p3532_p1 = pnand %p3531_p0, %p3530_p13  ;;  %p3539_p7 = por %p3538_p4, %p3537_p3 }
  0x19   : > { %p3533_p2 = pneg %p3532_p1 }
  0x1b   : > { %p3540_p8 = pnand %p3539_p7, %p3533_p2 }
  0x1d   : > { %3543 = shalt.err (!%p3540_p8)
}
  0x1e   : > { %s3672_s21 = smov [#allocation2]   ;;  %s3555_s26 = scalar_lea.vmem %s3800_s30, 512 }
  0x1f   : > { %3427 = dma.vmem_to_smem (!%p3796_p12), %s286_s28, 16, %s3672_s21, [#allocation5]  }
  0x20   : > { %p3556_p11 = scmp.ne.s32.totalorder %s3800_s30, %s3555_s26  ;;  %p3563_p1 = scmp.lt.s32.totalorder %s3800_s30, %s3800_s30 }
  0x21   : > { %p3564_p6 = scmp.lt.s32.totalorder %s3555_s26, %s3555_s26 }
  0x22   : > { %p3558_p9 = pnand %p3556_p11, %p3531_p0 }
  0x23   : > { %p3565_p3 = por %p3564_p6, %p3563_p1 }
  0x24   : > { %p3559_p13 = pneg %p3558_p9 }
  0x26   : > { %p3566_p2 = pnand %p3565_p3, %p3559_p13 }
  0x28   : > { %3569 = shalt.err (!%p3566_p2)
}
  0x29   : > { %s3673_s27 = smov 128   ;;  %s3674_s29 = smov 8  }
  0x2a   : > { %3430 = dma.hbm_to_vmem [thread:$0]  (!%p3796_p12), %s4616_s2, 512, %s3800_s30, [#allocation3], %s3673_s27, %s3673_s27, %s3674_s29  }
  0x2b   : > { %s3581_s20 = scalar_lea.vmem %s312_s18, 512  ;;  %p3589_p6 = scmp.lt.s32.totalorder %s312_s18, %s312_s18 }
  0x2c   : > { %p3582_p4 = scmp.ne.s32.totalorder %s312_s18, %s3581_s20  ;;  %p3590_p8 = scmp.lt.s32.totalorder %s3581_s20, %s3581_s20 }
  0x2e   : > { %p3584_p9 = pnand %p3582_p4, %p3531_p0  ;;  %p3591_p11 = por %p3590_p8, %p3589_p6 }
  0x30   : > { %p3585_p7 = pneg %p3584_p9 }
  0x32   : > { %p3592_p13 = pnand %p3591_p11, %p3585_p7 }
  0x34   : > { %3595 = shalt.err (!%p3592_p13)
}
  0x35   : > { %3433 = dma.hbm_to_vmem [thread:$0]  (!%p3796_p12), %s4618_s4, 512, %s312_s18, [#allocation8], %s3673_s27, %s3673_s27, %s3674_s29  }
  0x36   : > { %350 = sbr.rel (%p3785_p10) target bundleno = 1027 (0x403), region = 60  ;;  %p4630_p1 = scmp.eq.s32.totalorder (!%p3785_p10), %s3757_s17, 0 }
  0x3b   : > { %3639 = dma.done.wait (%p4630_p1), [#allocation5], 16   ;;  %p4631_p0 = pmov %p4630_p1 }
  0x3d   : > { %3641 = vsyncadd (%p4631_p0), [#allocation5], 4294967280  ;;  %p4632_p3 = pmov %p4631_p0 }
  0x3e   : > { %p4633_p2 = pmov %p4631_p0 }
  0x3f   : > { %3643 = dma.done.wait (%p4632_p3), [#allocation3], 512  }
  0x40   : > { %3645 = vsyncadd (%p4633_p2), [#allocation3], 4294966784  ;;  %p4634_p4 = pmov %p4631_p0 }
  0x41   : > { %p4635_p12 = pmov %p4631_p0 }
  0x42   : > { %3647 = dma.done.wait (%p4634_p4), [#allocation8], 512  }
  0x43   : > { %3649 = vsyncadd (%p4635_p12), [#allocation8], 4294966784 }
  0x44   : > { %364 = sfence }
  0x45   : > { %p397_p10 = scmp.lt.s32.totalorder %s3757_s17, 1  ;;  %v412_v0 = vld [vmem:[#allocation6] sm:$0xff]  ;;  %vm440_vm0 = vcmask 261120   ;;  %v413_v1 = vld [vmem:[#allocation6 + $0x8] sm:$0xff]  ;;  %v414_v2 = vld [vmem:[#allocation6 + $0x10] sm:$0xff]  ;;  %v3675_v3 = vmov 0.0  }
  0x46   : > { %525 = vmatprep.mubr.f32.mxu0 %v3675_v3  ;;  %v442_v4 = vsel %vm440_vm0, %v412_v0, 0  ;;  %v445_v5 = vsel %vm440_vm0, %v413_v1, 0  ;;  %674 = vmatprep.mubr.f32.mxu1 %v3675_v3  ;;  %v448_v6 = vsel %vm440_vm0, %v414_v2, 0  ;;  %v415_v7 = vld [vmem:[#allocation6 + $0x18] sm:$0xff]  ;;  %v3676_v13 = vmov 0   ;;  %v417_v15 = vld [vmem:[%s4617_s3 + $0x8] sm:$0xff] }
  0x47   : > { %v419_v8 = vld [vmem:[%s4617_s3 + $0x18] sm:$0xff]  ;;  %s398_s11 = scalar_select %p397_p10, %s3757_s17, 1  ;;  %v3854_v9 = vand.u32 4294901760, %v442_v4  ;;  %v3856_v10 = vand.u32 4294901760, %v445_v5  ;;  %v3858_v11 = vand.u32 4294901760, %v448_v6  ;;  %v451_v12 = vsel %vm440_vm0, %v415_v7, 0  ;;  %3487 = vset.pattern.permute.xlu0 %v3676_v13  ;;  %3488 = vset.pattern.permute.xlu1 %v3676_v13 }
  0x48   : > { %v3861_v14 = vand.u32 4294901760, %v451_v12  ;;  %437 = vperm.xlu0 %3487, %v419_v8   ;;  %v418_v18 = vld [vmem:[%s4617_s3 + $0x10] sm:$0xff]  ;;  %427 = vperm.xlu1 %3488, %v417_v15   ;;  %v416_v20 = vld [vmem:[%s4617_s3] sm:$0xff]  ;;  %s3220_s25 = sld [smem:[#allocation2 + $0x1]]  ;;  %vm3677_vm9 = vmmov 0   ;;  %vm2417_vm10 = vcmask 64512  }
  0x49   : > { %s3234_s29 = sshll.u32 %s398_s11, 6  ;;  %v3867_v16 = vsub.f32 %v442_v4, %v3854_v9  ;;  %v3870_v17 = vsub.f32 %v445_v5, %v3856_v10  ;;  %v3881_v19 = vsub.f32 %v448_v6, %v3858_v11  ;;  %s410_s18 = sld [smem:[#allocation2]] }
  0x4a   : > { %s3878_s26 = scalar_lea.vmem %s4615_s1, %s3234_s29  ;;  %v3916_v32 = vsub.f32 %v451_v12, %v3861_v14  ;;  %s394_s11 = sand.u32 1, %s3660_s14  }
  0x4b   : > { %v3887_v21 = vld [vmem:[%s3878_s26 + $0x38] sm:$0xff]  ;;  %v3890_v22 = vld [vmem:[%s3878_s26 + $0x30] sm:$0xff]  ;;  %v3893_v23 = vld [vmem:[%s3878_s26 + $0x28] sm:$0xff]  ;;  %v528_v24 = vand.u32 4294901760, %v3867_v16  ;;  %v539_v25 = vand.u32 4294901760, %v3870_v17  ;;  %v550_v42 = vand.u32 4294901760, %v3881_v19 }
  0x4c   : > { %v3898_v26 = vand.u32 4294901760, %v3887_v21  ;;  %v3901_v27 = vand.u32 4294901760, %v3890_v22  ;;  %v3904_v28 = vand.u32 4294901760, %v3893_v23  ;;  %v3907_v29 = vld [vmem:[%s3878_s26 + $0x20] sm:$0xff]  ;;  %v3910_v30 = vld [vmem:[%s3878_s26 + $0x18] sm:$0xff]  ;;  %v3913_v31 = vld [vmem:[%s3878_s26 + $0x10] sm:$0xff]  ;;  %432 = vperm.xlu0 %3487, %v418_v18   ;;  %422 = vperm.xlu1 %3488, %v416_v20  }
  0x4d   : > { %v3919_v33 = vand.u32 4294901760, %v3907_v29  ;;  %v3922_v34 = vand.u32 4294901760, %v3910_v30  ;;  %v3925_v35 = vand.u32 4294901760, %v3913_v31  ;;  %v3928_v36 = vld [vmem:[%s3878_s26 + $0x8] sm:$0xff]  ;;  %v3931_v37 = vld [vmem:[%s3878_s26] sm:$0xff]  ;;  %v529_v38 = vsub.f32 %v3867_v16, %v528_v24  ;;  %s3235_s29 = sshll.u32 %s3757_s17, 10 }
  0x4e   : > { %478 = vmatprep.subr.mxu0 %v3898_v26  ;;  %v3938_v39 = vand.u32 4294901760, %v3928_v36  ;;  %v3942_v40 = vsub.f32 %v3887_v21, %v3898_v26  ;;  %v3946_v41 = vsub.f32 %v3890_v22, %v3901_v27  ;;  %v3951_v43 = vand.u32 4294901760, %v3931_v37  ;;  %s4567_s17 = scalar_lea.hbm %s4624_s10, %s3235_s29  ;;  %s4574_s21 = scalar_lea.sflag [#allocation4], %s394_s11 }
  0x4f   : > { %480 = vmatpush1.msra.mxu0 %v3901_v27  ;;  %v530_v44 = vand.u32 4294901760, %v529_v38  ;;  %v3955_v45 = vsub.f32 %v3893_v23, %v3904_v28  ;;  %v3959_v46 = vsub.f32 %v3907_v29, %v3919_v33  ;;  %v3966_v49 = vsub.f32 %v3910_v30, %v3922_v34  ;;  %s3678_s30 = smov [#allocation9]  }
  0x50   : > { %482 = vmatprep.subr.mxu0 %v3904_v28  ;;  %v596_v47 = vand.u32 4294901760, %v3942_v40  ;;  %v602_v48 = vand.u32 4294901760, %v3946_v41  ;;  %v3970_v50 = vsub.f32 %v3913_v31, %v3925_v35  ;;  %v540_v53 = vsub.f32 %v3870_v17, %v539_v25 }
  0x51   : > { %484 = vmatpush1.msra.mxu0 %v3919_v33  ;;  %v608_v51 = vand.u32 4294901760, %v3955_v45  ;;  %v614_v52 = vand.u32 4294901760, %v3959_v46  ;;  %v3980_v54 = vsub.f32 %v3928_v36, %v3938_v39  ;;  %v620_v57 = vand.u32 4294901760, %v3966_v49 }
  0x52   : > { %486 = vmatprep.subr.mxu0 %v3922_v34  ;;  %v597_v55 = vsub.f32 %v3942_v40, %v596_v47  ;;  %v603_v56 = vsub.f32 %v3946_v41, %v602_v48  ;;  %v626_v58 = vand.u32 4294901760, %v3970_v50  ;;  %v4001_v62 = vsub.f32 %v3931_v37, %v3951_v43 }
  0x53   : > { %488 = vmatpush1.msra.mxu0 %v3925_v35  ;;  %v609_v59 = vsub.f32 %v3955_v45, %v608_v51  ;;  %v615_v60 = vsub.f32 %v3959_v46, %v614_v52  ;;  %v632_v61 = vand.u32 4294901760, %v3980_v54  ;;  %v621_v1 = vsub.f32 %v3966_v49, %v620_v57 }
  0x54   : > { %490 = vmatprep.subr.mxu0 %v3938_v39  ;;  %v598_v63 = vand.u32 4294901760, %v597_v55  ;;  %v604_v0 = vand.u32 4294901760, %v603_v56  ;;  %v627_v2 = vsub.f32 %v3970_v50, %v626_v58  ;;  %v638_v7 = vand.u32 4294901760, %v4001_v62 }
  0x55   : > { %492 = vmatpush1.msra.mxu0 %v3951_v43  ;;  %v610_v4 = vand.u32 4294901760, %v609_v59  ;;  %v616_v5 = vand.u32 4294901760, %v615_v60  ;;  %v633_v6 = vsub.f32 %v3980_v54, %v632_v61  ;;  %v541_v8 = vand.u32 4294901760, %v540_v53 }
  0x56   : > { %531 = vmatmul.mubr.f32.vlgmr.msra.gmra.mxu0 %v530_v44  ;;  %599 = vmatprep.subr.mxu1 %v598_v63  ;;  %v622_v12 = vand.u32 4294901760, %v621_v1  ;;  %v551_v13 = vsub.f32 %v3881_v19, %v550_v42  ;;  %v561_v15 = vand.u32 4294901760, %v3916_v32  ;;  %v628_v18 = vand.u32 4294901760, %v627_v2 }
  0x57   : > { %605 = vmatpush1.msra.mxu1 %v604_v0  ;;  %536 = vmatprep.mubr.f32.mxu0 %v3675_v3  ;;  %v639_v20 = vsub.f32 %v4001_v62, %v638_v7  ;;  %v634_v38 = vand.u32 4294901760, %v633_v6 }
  0x58   : > { %611 = vmatprep.subr.mxu1 %v610_v4  ;;  %729 = vmatprep.subr.mxu0 %v3942_v40  ;;  %v552_v53 = vand.u32 4294901760, %v551_v13  ;;  %v562_v55 = vsub.f32 %v3916_v32, %v561_v15  ;;  %v1907_v40 = vadd.f32 %v3887_v21, %v3890_v22  ;;  %v1898_v21 = vadd.f32 %v3928_v36, %v3931_v37 }
  0x59   : > { %617 = vmatpush1.msra.mxu1 %v616_v5  ;;  %v640_v44 = vand.u32 4294901760, %v639_v20  ;;  %732 = vmatpush1.msra.mxu0 %v3946_v41 }
  0x5a   : > { %542 = vmatmul.mubr.f32.gmra.mxu0 %v541_v8  ;;  %623 = vmatprep.subr.mxu1 %v622_v12  ;;  %v563_v56 = vand.u32 4294901760, %v562_v55  ;;  %v1169_v8 = vld [vmem:[#allocation7 + $0x8] sm:$0xff] }
  0x5b   : > { %629 = vmatpush1.msra.mxu1 %v628_v18  ;;  %547 = vmatprep.mubr.f32.mxu0 %v3675_v3 }
  0x5c   : > { %635 = vmatprep.subr.mxu1 %v634_v38  ;;  %735 = vmatprep.subr.mxu0 %v3955_v45 }
  0x5d   : > { %641 = vmatpush1.msra.mxu1 %v640_v44  ;;  %738 = vmatpush1.msra.mxu0 %v3959_v46 }
  0x5e   : > { %553 = vmatmul.mubr.f32.gmra.mxu0 %v552_v53  ;;  %676 = vmatmul.mubr.f32.vlgmr.msra.gmra.mxu1 %v3854_v9 }
  0x5f   : > { %558 = vmatprep.mubr.f32.mxu0 %v3675_v3  ;;  %681 = vmatprep.mubr.f32.mxu1 %v3675_v3 }
  0x60   : > { %741 = vmatprep.subr.mxu0 %v3966_v49  ;;  %841 = vmatprep.subr.mxu1 %v3898_v26 }
  0x61   : > { %744 = vmatpush1.msra.mxu0 %v3970_v50  ;;  %843 = vmatpush1.msra.mxu1 %v3901_v27 }
  0x62   : > { %564 = vmatmul.mubr.f32.gmra.mxu0 %v563_v56  ;;  %683 = vmatmul.mubr.f32.gmra.mxu1 %v3856_v10 }
  0x63   : > { %747 = vmatprep.subr.mxu0 %v3980_v54  ;;  %688 = vmatprep.mubr.f32.mxu1 %v3675_v3 }
  0x64   : > { %750 = vmatpush1.msra.mxu0 %v4001_v62  ;;  %783 = vmatprep.mubr.f32.mxu0 %v3675_v3 }
  0x65   : > { %845 = vmatprep.subr.mxu1 %v3904_v28  ;;  %952 = vmatprep.subr.mxu0 %v596_v47 }
  0x66   : > { %690 = vmatmul.mubr.f32.gmra.mxu1 %v3858_v11  ;;  %786 = vmatmul.mubr.f32.vlgmr.msra.gmra.mxu0 %v3867_v16  ;;  %v1904_v16 = vadd.f32 %v3893_v23, %v3907_v29 }
  0x67   : > { %695 = vmatprep.mubr.f32.mxu1 %v3675_v3  ;;  %791 = vmatprep.mubr.f32.mxu0 %v3675_v3 }
  0x68   : > { %847 = vmatpush1.msra.mxu1 %v3919_v33  ;;  %956 = vmatpush1.msra.mxu0 %v602_v48 }
  0x69   : > { %849 = vmatprep.subr.mxu1 %v3922_v34  ;;  %960 = vmatprep.subr.mxu0 %v608_v51  ;;  %v1168_v51 = vld [vmem:[#allocation7] sm:$0xff] }
  0x6a   : > { %697 = vmatmul.mubr.f32.gmra.mxu1 %v3861_v14  ;;  %794 = vmatmul.mubr.f32.gmra.mxu0 %v3870_v17  ;;  %v1901_v17 = vadd.f32 %v3910_v30, %v3913_v31 }
  0x6b   : > { %851 = vmatpush1.msra.mxu1 %v3925_v35  ;;  %799 = vmatprep.mubr.f32.mxu0 %v3675_v3 }
  0x6c   : > { %853 = vmatprep.subr.mxu1 %v3938_v39  ;;  %888 = vmatprep.mubr.f32.mxu1 %v3675_v3 }
  0x6d   : > { %855 = vmatpush1.msra.mxu1 %v3951_v43  ;;  %964 = vmatpush1.msra.mxu0 %v614_v52 }
  0x6e   : > { %802 = vmatmul.mubr.f32.gmra.mxu0 %v3881_v19  ;;  %892 = vmatmul.mubr.f32.vlgmr.msra.gmra.mxu1 %v528_v24  ;;  %v1172_v19 = vld [vmem:[%s4619_s5] sm:$0xff] }
  0x6f   : > { %807 = vmatprep.mubr.f32.mxu0 %v3675_v3  ;;  %897 = vmatprep.mubr.f32.mxu1 %v3675_v3 }
  0x70   : > { %968 = vmatprep.subr.mxu0 %v620_v57  ;;  %1067 = vmatprep.subr.mxu1 %v3898_v26 }
  0x71   : > { %972 = vmatpush1.msra.mxu0 %v626_v58  ;;  %1069 = vmatpush1.msra.mxu1 %v3901_v27  ;;  %v1197_v58 = vsel %vm440_vm0, %v1168_v51, 0 }
  0x72   : > { %810 = vmatmul.mubr.f32.gmra.mxu0 %v3916_v32  ;;  %901 = vmatmul.mubr.f32.gmra.mxu1 %v539_v25  ;;  %v4140_v0 = vand.u32 4294901760, %v1197_v58 }
  0x73   : > { %976 = vmatprep.subr.mxu0 %v632_v61  ;;  %906 = vmatprep.mubr.f32.mxu1 %v3675_v3 }
  0x74   : > { %980 = vmatpush1.msra.mxu0 %v638_v7  ;;  %1013 = vmatprep.mubr.f32.mxu0 %v3675_v3  ;;  %v4143_v20 = vsub.f32 %v1197_v58, %v4140_v0 }
  0x75   : > { %1071 = vmatprep.subr.mxu1 %v3904_v28  ;;  %1908 = vadd.xlane.f32.xlu0 %v1907_v40  ;;  %v4145_v40 = vstv %s3220_s25 }
  0x76   : > { %910 = vmatmul.mubr.f32.gmra.mxu1 %v550_v42  ;;  %1015 = vmatmul.mubr.f32.vlgmr.msra.gmra.mxu0 %v3854_v9 }
  0x77   : > { %915 = vmatprep.mubr.f32.mxu1 %v3675_v3  ;;  %1020 = vmatprep.mubr.f32.mxu0 %v3675_v3 }
  0x78   : > { %1073 = vmatpush1.msra.mxu1 %v3919_v33  ;;  %1905 = vadd.xlane.f32.xlu1 %v1904_v16  ;;  %v4148_v16 = vsel %vm440_vm0, %v1169_v8, 0 }
  0x79   : > { %1075 = vmatprep.subr.mxu1 %v3922_v34  ;;  %1902 = vadd.xlane.f32.xlu0 %v1901_v17 }
  0x7a   : > { %919 = vmatmul.mubr.f32.gmra.mxu1 %v561_v15  ;;  %1022 = vmatmul.mubr.f32.gmra.mxu0 %v3856_v10 }
  0x7b   : > { %1077 = vmatpush1.msra.mxu1 %v3925_v35  ;;  %1027 = vmatprep.mubr.f32.mxu0 %v3675_v3 }
  0x7c   : > { %1079 = vmatprep.subr.mxu1 %v3938_v39  ;;  %1114 = vmatprep.mubr.f32.mxu1 %v3675_v3 }
  0x7d   : > { %1081 = vmatpush1.msra.mxu1 %v3951_v43  ;;  %1899 = vadd.xlane.f32.xlu0 %v1898_v21 }
  0x7e   : > { %1029 = vmatmul.mubr.f32.gmra.mxu0 %v3858_v11  ;;  %1116 = vmatmul.mubr.f32.vlgmr.msra.gmra.mxu1 %v3854_v9  ;;  %v1174_v9 = vld [vmem:[%s4619_s5 + $0x10] sm:$0xff] }
  0x7f   : > { %1034 = vmatprep.mubr.f32.mxu0 %v3675_v3  ;;  %1121 = vmatprep.mubr.f32.mxu1 %v3675_v3 }
  0x82   : > { %1036 = vmatmul.mubr.f32.gmra.mxu0 %v3861_v14  ;;  %1123 = vmatmul.mubr.f32.gmra.mxu1 %v3856_v10  ;;  %v1175_v10 = vld [vmem:[%s4619_s5 + $0x18] sm:$0xff] }
  0x83   : > { %1128 = vmatprep.mubr.f32.mxu1 %v3675_v3  ;;  %1280 = vmatprep.mubr.f32.mxu0 %v3675_v3 }
  0x86   : > { %1130 = vmatmul.mubr.f32.gmra.mxu1 %v3858_v11  ;;  %v1173_v11 = vld [vmem:[%s4619_s5 + $0x8] sm:$0xff] }
  0x87   : > { %1135 = vmatprep.mubr.f32.mxu1 %v3675_v3 }
  0x89   : > { %1178 = vperm.xlu1 %3488, %v1172_v19  }
  0x8a   : > { %1137 = vmatmul.mubr.f32.gmra.mxu1 %v3861_v14 }
  0x8b   : > { %1429 = vmatprep.mubr.f32.mxu1 %v3675_v3 }
  0x8d   : > { %1188 = vperm.xlu1 %3488, %v1174_v9  }
  0x91   : > { %1193 = vperm.xlu1 %3488, %v1175_v10  }
  0x93   : > { %1183 = vperm.xlu0 %3487, %v1173_v11  }
  0xc3   : > { %v438_v48 = vpop.permute.xlu0 %437  ;;  %v428_v52 = vpop.permute.xlu1 %427 }
  0xc7   : > { %v433_v61 = vpop.permute.xlu0 %432  ;;  %v423_v2 = vpop.permute.xlu1 %422 }
 0x116   : > { %v532_v22 = vpop.f32.mrf.mxu0 }
 0x117   : > { %v533_v12 = vadd.f32 %v532_v22, %v423_v2 }
 0x118   : > { %v534_v23 = vpop.f32.mrf.mxu0 }
 0x119   : > { %v535_v13 = vadd.f32 %v534_v23, %v423_v2 }
 0x11a   : > { %v543_v14 = vpop.f32.mrf.mxu0 }
 0x11b   : > { %v544_v1 = vadd.f32 %v543_v14, %v428_v52 }
 0x11c   : > { %v545_v24 = vpop.f32.mrf.mxu0 }
 0x11d   : > { %v546_v6 = vadd.f32 %v545_v24, %v428_v52  ;;  %v1283_v24 = vand.u32 4294901760, %v4143_v20 }
 0x11e   : > { %v554_v25 = vpop.f32.mrf.mxu0  ;;  %v677_v26 = vpop.f32.mrf.mxu1 }
 0x11f   : > { %v555_v7 = vadd.f32 %v554_v25, %v433_v61  ;;  %v678_v10 = vadd.f32 %v677_v26, %v533_v12 }
 0x120   : > { %v556_v27 = vpop.f32.mrf.mxu0  ;;  %v679_v28 = vpop.f32.mrf.mxu1 }
 0x121   : > { %v680_v53 = vadd.f32 %v679_v28, %v535_v13  ;;  %v557_v11 = vadd.f32 %v556_v27, %v433_v61 }
 0x122   : > { %v565_v29 = vpop.f32.mrf.mxu0  ;;  %v684_v30 = vpop.f32.mrf.mxu1 }
 0x123   : > { %v685_v38 = vadd.f32 %v684_v30, %v544_v1  ;;  %v566_v17 = vadd.f32 %v565_v29, %v438_v48 }
 0x124   : > { %v567_v31 = vpop.f32.mrf.mxu0  ;;  %v686_v32 = vpop.f32.mrf.mxu1 }
 0x125   : > { %v687_v44 = vadd.f32 %v686_v32, %v546_v6  ;;  %v4152_v32 = vand.u32 4294901760, %v4148_v16  ;;  %v568_v51 = vadd.f32 %v567_v31, %v438_v48 }
 0x126   : > { %v691_v33 = vpop.f32.mrf.mxu1  ;;  %v787_v34 = vpop.f32.mrf.mxu0 }
 0x127   : > { %v692_v21 = vadd.f32 %v691_v33, %v555_v7  ;;  %v788_v52 = vadd.f32 %v787_v34, %v678_v10 }
 0x128   : > { %v693_v35 = vpop.f32.mrf.mxu1  ;;  %v789_v36 = vpop.f32.mrf.mxu0 }
 0x129   : > { %v790_v22 = vadd.f32 %v789_v36, %v680_v53  ;;  %v694_v58 = vadd.f32 %v693_v35, %v557_v11 }
 0x12a   : > { %v698_v37 = vpop.f32.mrf.mxu1  ;;  %v795_v39 = vpop.f32.mrf.mxu0 }
 0x12b   : > { %v796_v19 = vadd.f32 %v795_v39, %v685_v38  ;;  %v699_v39 = vadd.f32 %v698_v37, %v566_v17 }
 0x12c   : > { %v4133_v41 = vpop.f32.mrf.mxu1  ;;  %v797_v42 = vpop.f32.mrf.mxu0 }
 0x12d   : > { %v798_v9 = vadd.f32 %v797_v42, %v687_v44  ;;  %v701_v36 = vadd.f32 %v4133_v41, %v568_v51 }
 0x12e   : > { %v803_v43 = vpop.f32.mrf.mxu0  ;;  %v893_v45 = vpop.f32.mrf.mxu1 }
 0x12f   : > { %v804_v25 = vadd.f32 %v803_v43, %v692_v21  ;;  %v894_v61 = vadd.f32 %v893_v45, %v788_v52 }
 0x130   : > { %v805_v46 = vpop.f32.mrf.mxu0  ;;  %v895_v47 = vpop.f32.mrf.mxu1 }
 0x131   : > { %v896_v29 = vadd.f32 %v895_v47, %v790_v22  ;;  %v806_v1 = vadd.f32 %v805_v46, %v694_v58 }
 0x132   : > { %v4135_v49 = vpop.f32.mrf.mxu0  ;;  %v902_v50 = vpop.f32.mrf.mxu1 }
 0x133   : > { %v903_v28 = vadd.f32 %v902_v50, %v796_v19  ;;  %v812_v6 = vadd.f32 %v4135_v49, %v699_v39 }
 0x134   : > { %v4137_v54 = vpop.f32.mrf.mxu0  ;;  %v904_v57 = vpop.f32.mrf.mxu1 }
 0x135   : > { %v905_v30 = vadd.f32 %v904_v57, %v798_v9  ;;  %v1170_v57 = vld [vmem:[#allocation7 + $0x10] sm:$0xff]  ;;  %v814_v35 = vadd.f32 %v4137_v54, %v701_v36 }
 0x136   : > { %v911_v59 = vpop.f32.mrf.mxu1  ;;  %v1016_v60 = vpop.f32.mrf.mxu0  ;;  %v4159_v46 = vsel %vm440_vm0, %v1170_v57, 0 }
 0x137   : > { %v912_v42 = vadd.f32 %v911_v59, %v804_v25  ;;  %v1017_v47 = vadd.f32 %v1016_v60, %v894_v61  ;;  %v4198_v61 = vand.u32 4294901760, %v4159_v46 }
 0x138   : > { %v913_v62 = vpop.f32.mrf.mxu1  ;;  %v1018_v63 = vpop.f32.mrf.mxu0 }
 0x139   : > { %v1019_v2 = vadd.f32 %v1018_v63, %v896_v29  ;;  %v914_v37 = vadd.f32 %v913_v62, %v806_v1  ;;  %v1171_v29 = vld [vmem:[#allocation7 + $0x18] sm:$0xff] }
 0x13a   : > { %v920_v4 = vpop.f32.mrf.mxu1  ;;  %v1023_v5 = vpop.f32.mrf.mxu0 }
 0x13b   : > { %v1024_v26 = vadd.f32 %v1023_v5, %v903_v28  ;;  %v921_v5 = vadd.f32 %v920_v4, %v812_v6 }
 0x13c   : > { %v922_v15 = vpop.f32.mrf.mxu1  ;;  %v1025_v18 = vpop.f32.mrf.mxu0 }
 0x13d   : > { %v1026_v27 = vadd.f32 %v1025_v18, %v905_v30  ;;  %v923_v63 = vadd.f32 %v922_v15, %v814_v35 }
 0x13e   : > { %v1030_v55 = vpop.f32.mrf.mxu0  ;;  %v1117_v56 = vpop.f32.mrf.mxu1 }
 0x13f   : > { %v1031_v7 = vadd.f32 %v1030_v55, %v912_v42  ;;  %v1118_v8 = vadd.f32 %v1117_v56, %v1017_v47 }
 0x140   : > { %v1032_v23 = vpop.f32.mrf.mxu0  ;;  %v1119_v14 = vpop.f32.mrf.mxu1 }
 0x141   : > { %v1120_v48 = vadd.f32 %v1119_v14, %v1019_v2  ;;  %v1033_v12 = vadd.f32 %v1032_v23, %v914_v37  ;;  %vm1143_vm5 = vcmp.ge.f32.partialorder %v1118_v8, 0.0  ;;  %v1152_v56 = vmul.f32 %v4145_v40, %v1118_v8 }
 0x142   : > { %v1124_v33 = vpop.f32.mrf.mxu1  ;;  %v1037_v43 = vpop.f32.mrf.mxu0  ;;  %v4228_v37 = vsub.f32 %v4159_v46, %v4198_v61 }
 0x143   : > { %v1125_v31 = vadd.f32 %v1124_v33, %v1024_v26  ;;  %v1038_v18 = vadd.f32 %v1037_v43, %v921_v5  ;;  %vm1144_vm3 = vcmp.ge.f32.partialorder %v1120_v48, 0.0  ;;  %v1153_v62 = vmul.f32 %v4145_v40, %v1120_v48 }
 0x144   : > { %v1126_v50 = vpop.f32.mrf.mxu1  ;;  %v1039_v49 = vpop.f32.mrf.mxu0  ;;  %v1160_v51 = vsel %vm1143_vm5, %v1118_v8, %v1152_v56  ;;  %v4187_v26 = vsub.f32 %v4148_v16, %v4152_v32  ;;  %v1284_v16 = vsub.f32 %v4143_v20, %v1283_v24  ;;  %v1206_v43 = vsel %vm440_vm0, %v1171_v29, 0 }
 0x145   : > { %v1127_v34 = vadd.f32 %v1126_v50, %v1026_v27  ;;  %v1154_v54 = vmul.f32 %v4145_v40, %v1125_v31  ;;  %vm1145_vm4 = vcmp.ge.f32.partialorder %v1125_v31, 0.0  ;;  %v1040_v44 = vadd.f32 %v1039_v49, %v923_v63  ;;  %v1909_v29 = vpop.xlane.xlu0 %1908 }
 0x146   : > { %v1131_v59 = vpop.f32.mrf.mxu1  ;;  %v1161_v11 = vsel %vm1144_vm3, %v1120_v48, %v1153_v62  ;;  %v4200_v1 = vand.u32 4294901760, %v1160_v51  ;;  %v4230_v48 = vand.u32 4294901760, %v1206_v43 }
 0x147   : > { %v1155_v41 = vmul.f32 %v4145_v40, %v1127_v34  ;;  %v1132_v45 = vadd.f32 %v1131_v59, %v1031_v7  ;;  %vm1146_vm1 = vcmp.ge.f32.partialorder %v1127_v34, 0.0  ;;  %v1162_v19 = vsel %vm1145_vm4, %v1125_v31, %v1154_v54 }
 0x148   : > { %v1133_v13 = vpop.f32.mrf.mxu1  ;;  %v4176_v52 = vand.u32 4294901760, %v1162_v19  ;;  %v4180_v33 = vand.u32 4294901760, %v1161_v11  ;;  %v4233_v59 = vsub.f32 %v1160_v51, %v4200_v1  ;;  %v1305_v54 = vand.u32 4294901760, %v4228_v37 }
 0x149   : > { %vm1147_vm2 = vcmp.ge.f32.partialorder %v1132_v45, 0.0  ;;  %v1156_v60 = vmul.f32 %v4145_v40, %v1132_v45  ;;  %v1134_v4 = vadd.f32 %v1133_v13, %v1033_v12  ;;  %v1163_v53 = vsel %vm1146_vm1, %v1127_v34, %v1155_v41 }
 0x14a   : > { %v1138_v38 = vpop.f32.mrf.mxu1  ;;  %v4168_v22 = vand.u32 4294901760, %v1163_v53  ;;  %v4210_v50 = vsub.f32 %v1162_v19, %v4176_v52  ;;  %v4219_v31 = vsub.f32 %v1161_v11, %v4180_v33  ;;  %v1294_v34 = vand.u32 4294901760, %v4187_v26 }
 0x14b   : > { %v1164_v15 = vsel %vm1147_vm2, %v1132_v45, %v1156_v60  ;;  %v1139_v55 = vadd.f32 %v1138_v38, %v1038_v18  ;;  %vm1148_vm6 = vcmp.ge.f32.partialorder %v1134_v4, 0.0  ;;  %v1157_v17 = vmul.f32 %v4145_v40, %v1134_v4 }
 0x14c   : > { %v1140_v21 = vpop.f32.mrf.mxu1  ;;  %v4170_v23 = vand.u32 4294901760, %v1164_v15  ;;  %v4203_v2 = vsub.f32 %v1163_v53, %v4168_v22  ;;  %v1285_v45 = vand.u32 4294901760, %v1284_v16  ;;  %v1381_v8 = vand.u32 4294901760, %v4210_v50 }
 0x14d   : > { %vm1149_vm7 = vcmp.ge.f32.partialorder %v1139_v55, 0.0  ;;  %v1158_v9 = vmul.f32 %v4145_v40, %v1139_v55  ;;  %v1141_v10 = vadd.f32 %v1140_v21, %v1040_v44  ;;  %v1165_v14 = vsel %vm1148_vm6, %v1134_v4, %v1157_v17 }
 0x14e   : > { %v4172_v25 = vand.u32 4294901760, %v1165_v14  ;;  %v4190_v27 = vsub.f32 %v1164_v15, %v4170_v23  ;;  %v1375_v41 = vand.u32 4294901760, %v4203_v2  ;;  %v1295_v12 = vsub.f32 %v4187_v26, %v1294_v34 }
 0x14f   : > { %v1166_v28 = vsel %vm1149_vm7, %v1139_v55, %v1158_v9  ;;  %vm1150_vm8 = vcmp.ge.f32.partialorder %v1141_v10, 0.0  ;;  %v1159_v30 = vmul.f32 %v4145_v40, %v1141_v10  ;;  %v1387_v49 = vand.u32 4294901760, %v4219_v31 }
 0x150   : > { %v4178_v58 = vand.u32 4294901760, %v1166_v28  ;;  %v4183_v39 = vsub.f32 %v1165_v14, %v4172_v25  ;;  %v1369_v47 = vand.u32 4294901760, %v4190_v27  ;;  %v4257_v60 = vsub.f32 %v1206_v43, %v4230_v48 }
 0x151   : > { %v1167_v42 = vsel %vm1150_vm8, %v1141_v10, %v1159_v30  ;;  %v1376_v4 = vsub.f32 %v4203_v2, %v1375_v41  ;;  %v1393_v38 = vand.u32 4294901760, %v4233_v59  ;;  %v1382_v53 = vsub.f32 %v4210_v50, %v1381_v8 }
 0x152   : > { %v4193_v40 = vsub.f32 %v1166_v28, %v4178_v58  ;;  %v4195_v36 = vand.u32 4294901760, %v1167_v42  ;;  %v1363_v7 = vand.u32 4294901760, %v4183_v39  ;;  %v1370_v18 = vsub.f32 %v4190_v27, %v1369_v47 }
 0x153   : > { %v1296_v15 = vand.u32 4294901760, %v1295_v12  ;;  %v1388_v55 = vsub.f32 %v4219_v31, %v1387_v49  ;;  %v1306_v17 = vsub.f32 %v4228_v37, %v1305_v54  ;;  %v1316_v21 = vand.u32 4294901760, %v4257_v60 }
 0x154   : > { %v4213_v57 = vsub.f32 %v1167_v42, %v4195_v36  ;;  %1233 = vmatprep.subr.mxu0 %v4195_v36  ;;  %v1357_v6 = vand.u32 4294901760, %v4193_v40  ;;  %v1364_v46 = vsub.f32 %v4183_v39, %v1363_v7  ;;  %v1371_v56 = vand.u32 4294901760, %v1370_v18 }
 0x155   : > { %1235 = vmatpush1.msra.mxu0 %v4178_v58  ;;  %v1377_v19 = vand.u32 4294901760, %v1376_v4  ;;  %v1394_v9 = vsub.f32 %v4233_v59, %v1393_v38  ;;  %v1383_v10 = vand.u32 4294901760, %v1382_v53  ;;  %v1389_v11 = vand.u32 4294901760, %v1388_v55 }
 0x156   : > { %1237 = vmatprep.subr.mxu0 %v4172_v25  ;;  %v1351_v35 = vand.u32 4294901760, %v4213_v57  ;;  %v1358_v5 = vsub.f32 %v4193_v40, %v1357_v6  ;;  %v1365_v44 = vand.u32 4294901760, %v1364_v46  ;;  %v1307_v14 = vand.u32 4294901760, %v1306_v17 }
 0x157   : > { %1239 = vmatpush1.msra.mxu0 %v4170_v23  ;;  %v1317_v28 = vsub.f32 %v4257_v60, %v1316_v21  ;;  %v1395_v30 = vand.u32 4294901760, %v1394_v9  ;;  %v1914_v42 = vmul.f32 0.00390625, %v1909_v29 }
 0x158   : > { %1241 = vmatprep.subr.mxu0 %v4168_v22  ;;  %v1352_v63 = vsub.f32 %v4213_v57, %v1351_v35  ;;  %v1359_v62 = vand.u32 4294901760, %v1358_v5 }
 0x159   : > { %1243 = vmatpush1.msra.mxu0 %v4176_v52  ;;  %v1318_v51 = vand.u32 4294901760, %v1317_v28 }
 0x15a   : > { %1245 = vmatprep.subr.mxu0 %v4180_v33  ;;  %v1353_v13 = vand.u32 4294901760, %v1352_v63 }
 0x15b   : > { %1247 = vmatpush1.msra.mxu0 %v4200_v1 }
 0x15c   : > { %1286 = vmatmul.mubr.f32.vlgmr.msra.gmra.mxu0 %v1285_v45  ;;  %1354 = vmatprep.subr.mxu1 %v1353_v13 }
 0x15d   : > { %1484 = vmatprep.subr.mxu0 %v4213_v57  ;;  %1360 = vmatpush1.msra.mxu1 %v1359_v62 }
 0x15e   : > { %1487 = vmatpush1.msra.mxu0 %v4193_v40  ;;  %1366 = vmatprep.subr.mxu1 %v1365_v44  ;;  %v4328_v40 = vand.u32 4294901760, %v1914_v42 }
 0x15f   : > { %1490 = vmatprep.subr.mxu0 %v4183_v39  ;;  %1291 = vmatprep.mubr.f32.mxu0 %v3675_v3  ;;  %v1906_v39 = vpop.xlane.xlu1 %1905 }
 0x160   : > { %1372 = vmatpush1.msra.mxu1 %v1371_v56  ;;  %1493 = vmatpush1.msra.mxu0 %v4190_v27  ;;  %v1915_v27 = vld [vmem:[%s4620_s6] sm:$0xff]  ;;  %v4341_v43 = vsub.f32 %v1914_v42, %v4328_v40 }
 0x161   : > { %1297 = vmatmul.mubr.f32.gmra.mxu0 %v1296_v15  ;;  %1378 = vmatprep.subr.mxu1 %v1377_v19  ;;  %v1918_v16 = vsel %vm440_vm0, %v1915_v27, 0 }
 0x162   : > { %1496 = vmatprep.subr.mxu0 %v4203_v2  ;;  %1384 = vmatpush1.msra.mxu1 %v1383_v10  ;;  %v1913_v2 = vmul.f32 0.00390625, %v1906_v39 }
 0x163   : > { %1499 = vmatpush1.msra.mxu0 %v4210_v50  ;;  %1390 = vmatprep.subr.mxu1 %v1389_v11  ;;  %v1179_v62 = vpop.permute.xlu1 %1178 }
 0x164   : > { %1502 = vmatprep.subr.mxu0 %v4219_v31  ;;  %1302 = vmatprep.mubr.f32.mxu0 %v3675_v3  ;;  %v4343_v57 = vand.u32 4294901760, %v1913_v2 }
 0x165   : > { %1396 = vmatpush1.msra.mxu1 %v1395_v30  ;;  %1505 = vmatpush1.msra.mxu0 %v4233_v59 }
 0x166   : > { %1308 = vmatmul.mubr.f32.gmra.mxu0 %v1307_v14  ;;  %1431 = vmatmul.mubr.f32.vlgmr.msra.gmra.mxu1 %v4140_v0 }
 0x167   : > { %1596 = vmatprep.subr.mxu1 %v4195_v36  ;;  %1707 = vmatprep.subr.mxu0 %v1351_v35  ;;  %v1189_v10 = vpop.permute.xlu1 %1188 }
 0x168   : > { %1598 = vmatpush1.msra.mxu1 %v4178_v58  ;;  %1313 = vmatprep.mubr.f32.mxu0 %v3675_v3 }
 0x169   : > { %1600 = vmatprep.subr.mxu1 %v4172_v25  ;;  %1436 = vmatprep.mubr.f32.mxu1 %v3675_v3 }
 0x16a   : > { %1602 = vmatpush1.msra.mxu1 %v4170_v23  ;;  %1319 = vmatmul.mubr.f32.gmra.mxu0 %v1318_v51 }
 0x16b   : > { %1438 = vmatmul.mubr.f32.gmra.mxu1 %v4152_v32  ;;  %1604 = vmatprep.subr.mxu1 %v4168_v22 }
 0x16c   : > { %1606 = vmatpush1.msra.mxu1 %v4176_v52  ;;  %1443 = vmatprep.mubr.f32.mxu1 %v3675_v3 }
 0x16d   : > { %1608 = vmatprep.subr.mxu1 %v4180_v33  ;;  %1538 = vmatprep.mubr.f32.mxu0 %v3675_v3 }
 0x16e   : > { %1610 = vmatpush1.msra.mxu1 %v4200_v1  ;;  %1541 = vmatmul.mubr.f32.vlgmr.msra.gmra.mxu0 %v4143_v20  ;;  %v4349_v20 = vand.u32 4294901760, %v1918_v16 }
 0x16f   : > { %1445 = vmatmul.mubr.f32.gmra.mxu1 %v4198_v61  ;;  %1711 = vmatpush1.msra.mxu0 %v1357_v6 }
 0x170   : > { %1822 = vmatprep.subr.mxu1 %v4195_v36  ;;  %1715 = vmatprep.subr.mxu0 %v1363_v7  ;;  %v1903_v36 = vpop.xlane.xlu0 %1902 }
 0x171   : > { %1719 = vmatpush1.msra.mxu0 %v1369_v47  ;;  %1450 = vmatprep.mubr.f32.mxu1 %v3675_v3  ;;  %v1912_v50 = vmul.f32 0.00390625, %v1903_v36 }
 0x172   : > { %1546 = vmatprep.mubr.f32.mxu0 %v3675_v3  ;;  %1723 = vmatprep.subr.mxu0 %v1375_v41 }
 0x173   : > { %1452 = vmatmul.mubr.f32.gmra.mxu1 %v4230_v48  ;;  %1549 = vmatmul.mubr.f32.gmra.mxu0 %v4187_v26  ;;  %v4366_v26 = vsub.f32 %v1918_v16, %v4349_v20 }
 0x174   : > { %1727 = vmatpush1.msra.mxu0 %v1381_v8  ;;  %1554 = vmatprep.mubr.f32.mxu0 %v3675_v3 }
 0x175   : > { %1731 = vmatprep.subr.mxu0 %v1387_v49  ;;  %1643 = vmatprep.mubr.f32.mxu1 %v3675_v3  ;;  %v1991_v7 = vand.u32 4294901760, %v4366_v26 }
 0x176   : > { %1735 = vmatpush1.msra.mxu0 %v1393_v38 }
 0x177   : > { %1557 = vmatmul.mubr.f32.gmra.mxu0 %v4228_v37  ;;  %1647 = vmatmul.mubr.f32.vlgmr.msra.gmra.mxu1 %v1283_v24  ;;  %v1900_v24 = vpop.xlane.xlu0 %1899  ;;  %v1992_v37 = vsub.f32 %v4366_v26, %v1991_v7 }
 0x178   : > { %1824 = vmatpush1.msra.mxu1 %v4178_v58  ;;  %1562 = vmatprep.mubr.f32.mxu0 %v3675_v3  ;;  %v4357_v58 = vand.u32 4294901760, %v1912_v50 }
 0x179   : > { %1826 = vmatprep.subr.mxu1 %v4172_v25  ;;  %1652 = vmatprep.mubr.f32.mxu1 %v3675_v3  ;;  %v1911_v25 = vmul.f32 0.00390625, %v1900_v24  ;;  %v1993_v45 = vand.u32 4294901760, %v1992_v37 }
 0x17a   : > { %1828 = vmatpush1.msra.mxu1 %v4170_v23  ;;  %3296 = vmatprep.subr.mxu0 %v3675_v3  ;;  %v2026_v23 = vand.u32 4294901760, %v4341_v43 }
 0x17b   : > { %1830 = vmatprep.subr.mxu1 %v4168_v22  ;;  %1565 = vmatmul.mubr.f32.gmra.mxu0 %v4257_v60  ;;  %v4360_v22 = vsub.f32 %v1913_v2, %v4343_v57  ;;  %v1184_v17 = vpop.permute.xlu0 %1183 }
 0x17c   : > { %1656 = vmatmul.mubr.f32.gmra.mxu1 %v1294_v34  ;;  %1768 = vmatprep.mubr.f32.mxu0 %v3675_v3 }
 0x17d   : > { %1832 = vmatpush1.msra.mxu1 %v4176_v52  ;;  %1661 = vmatprep.mubr.f32.mxu1 %v3675_v3  ;;  %v4371_v52 = vand.u32 4294901760, %v1911_v25  ;;  %v2033_v6 = vand.u32 4294901760, %v4360_v22 }
 0x17e   : > { %1834 = vmatprep.subr.mxu1 %v4180_v33  ;;  %v2027_v33 = vsub.f32 %v4341_v43, %v2026_v23 }
 0x17f   : > { %1836 = vmatpush1.msra.mxu1 %v4200_v1  ;;  %1770 = vmatmul.mubr.f32.vlgmr.msra.gmra.mxu0 %v4140_v0  ;;  %v4379_v1 = vsub.f32 %v1912_v50, %v4357_v58  ;;  %v4390_v31 = vsub.f32 %v1911_v25, %v4371_v52  ;;  %v2034_v35 = vsub.f32 %v4360_v22, %v2033_v6 }
 0x180   : > { %1665 = vmatmul.mubr.f32.gmra.mxu1 %v1305_v54  ;;  %1775 = vmatprep.mubr.f32.mxu0 %v3675_v3  ;;  %v2028_v47 = vand.u32 4294901760, %v2027_v33 }
 0x181   : > { %1670 = vmatprep.mubr.f32.mxu1 %v3675_v3  ;;  %3297 = vmatpush3.msra.mxu0 %v4328_v40  ;;  %v2040_v34 = vand.u32 4294901760, %v4379_v1  ;;  %v2047_v59 = vand.u32 4294901760, %v4390_v31  ;;  %v2035_v41 = vand.u32 4294901760, %v2034_v35 }
 0x182   : > { %3298 = vmatprep.subr.mxu0 %v3675_v3  ;;  %3307 = vmatprep.subr.mxu1 %v3675_v3 }
 0x183   : > { %1777 = vmatmul.mubr.f32.gmra.mxu0 %v4152_v32  ;;  %v2041_v5 = vsub.f32 %v4379_v1, %v2040_v34 }
 0x184   : > { %1674 = vmatmul.mubr.f32.gmra.mxu1 %v1316_v21  ;;  %1782 = vmatprep.mubr.f32.mxu0 %v3675_v3 }
 0x185   : > { %1869 = vmatprep.mubr.f32.mxu1 %v3675_v3  ;;  %3299 = vmatpush3.msra.mxu0 %v4343_v57  ;;  %v2042_v63 = vand.u32 4294901760, %v2041_v5 }
 0x186   : > { %3300 = vmatprep.subr.mxu0 %v3675_v3 }
 0x187   : > { %1784 = vmatmul.mubr.f32.gmra.mxu0 %v4198_v61 }
 0x188   : > { %1871 = vmatmul.mubr.f32.vlgmr.msra.gmra.mxu1 %v4140_v0  ;;  %1789 = vmatprep.mubr.f32.mxu0 %v3675_v3  ;;  %v2048_v0 = vsub.f32 %v4390_v31, %v2047_v59 }
 0x189   : > { %1876 = vmatprep.mubr.f32.mxu1 %v3675_v3  ;;  %3301 = vmatpush3.msra.mxu0 %v4357_v58 }
 0x18a   : > { %3302 = vmatprep.subr.mxu0 %v3675_v3  ;;  %3308 = vmatpush3.msra.mxu1 %v2028_v47 }
 0x18b   : > { %1791 = vmatmul.mubr.f32.gmra.mxu0 %v4230_v48  ;;  %3309 = vmatprep.subr.mxu1 %v3675_v3 }
 0x18c   : > { %1878 = vmatmul.mubr.f32.gmra.mxu1 %v4152_v32  ;;  %3303 = vmatpush3.msra.mxu0 %v4371_v52  ;;  %v2049_v32 = vand.u32 4294901760, %v2048_v0 }
 0x18d   : > { %1883 = vmatprep.mubr.f32.mxu1 %v3675_v3  ;;  %3304 = vmatprep.mubr.msk.f32.mxu0 %vm3677_vm9, %v3675_v3 }
 0x18e   : > { %3318 = vmatprep.subr.mxu0 %v3675_v3  ;;  %3310 = vmatpush3.msra.mxu1 %v2035_v41 }
 0x18f   : > { %3305 = vmatmul.mubr.f32.vlgmr.msra.gmra.mxu0 %v1993_v45  ;;  %3311 = vmatprep.subr.mxu1 %v3675_v3 }
 0x190   : > { %1885 = vmatmul.mubr.f32.gmra.mxu1 %v4198_v61  ;;  %3319 = vmatpush3.msra.mxu0 %v4341_v43  ;;  %v2409_v61 = vld [vmem:[%s4622_s8] sm:$0xff]  ;;  %v1194_v43 = vpop.permute.xlu1 %1193 }
 0x191   : > { %3320 = vmatprep.subr.mxu0 %v3675_v3  ;;  %1890 = vmatprep.mubr.f32.mxu1 %v3675_v3 }
 0x192   : > { %3321 = vmatpush3.msra.mxu0 %v4360_v22  ;;  %3312 = vmatpush3.msra.mxu1 %v2042_v63 }
 0x193   : > { %3322 = vmatprep.subr.mxu0 %v3675_v3  ;;  %3313 = vmatprep.subr.mxu1 %v3675_v3 }
 0x194   : > { %1892 = vmatmul.mubr.f32.gmra.mxu1 %v4230_v48  ;;  %3323 = vmatpush3.msra.mxu0 %v4379_v1  ;;  %v2419_v48 = vsel %vm2417_vm10, %v2409_v61, 0 }
 0x195   : > { %3324 = vmatprep.subr.mxu0 %v3675_v3  ;;  %3314 = vmatpush3.msra.mxu1 %v2049_v32  ;;  %v4475_v46 = vand.u32 4294901760, %v2419_v48 }
 0x196   : > { %3325 = vmatpush3.msra.mxu0 %v4390_v31  ;;  %3315 = vmatprep.mubr.msk.f32.mxu1 %vm3677_vm9, %v3675_v3 }
 0x197   : > { %3326 = vmatprep.mubr.msk.f32.mxu0 %vm3677_vm9, %v3675_v3  ;;  %3329 = vmatprep.subr.mxu1 %v3675_v3  ;;  %v4478_v8 = vsub.f32 %v2419_v48, %v4475_v46 }
 0x198   : > { %3340 = vmatprep.subr.mxu0 %v3675_v3  ;;  %3316 = vmatmul.mubr.f32.vlgmr.msra.gmra.mxu1 %v4349_v20 }
 0x199   : > { %3327 = vmatmul.mubr.f32.vlgmr.msra.gmra.mxu0 %v4366_v26  ;;  %3330 = vmatpush3.msra.mxu1 %v4328_v40 }
 0x19a   : > { %3341 = vmatpush3.msra.mxu0 %v2026_v23  ;;  %3331 = vmatprep.subr.mxu1 %v3675_v3 }
 0x19b   : > { %3342 = vmatprep.subr.mxu0 %v3675_v3  ;;  %3332 = vmatpush3.msra.mxu1 %v4343_v57 }
 0x19c   : > { %3343 = vmatpush3.msra.mxu0 %v2033_v6  ;;  %3333 = vmatprep.subr.mxu1 %v3675_v3 }
 0x19d   : > { %3344 = vmatprep.subr.mxu0 %v3675_v3  ;;  %3334 = vmatpush3.msra.mxu1 %v4357_v58 }
 0x19e   : > { %3345 = vmatpush3.msra.mxu0 %v2040_v34  ;;  %3335 = vmatprep.subr.mxu1 %v3675_v3 }
 0x19f   : > { %3346 = vmatprep.subr.mxu0 %v3675_v3  ;;  %3336 = vmatpush3.msra.mxu1 %v4371_v52 }
 0x1a0   : > { %3347 = vmatpush3.msra.mxu0 %v2047_v59  ;;  %3337 = vmatprep.mubr.msk.f32.mxu1 %vm3677_vm9, %v3675_v3 }
 0x1a1   : > { %3351 = vmatprep.subr.mxu1 %v3675_v3  ;;  %3338 = vmatmul.mubr.f32.vlgmr.msra.gmra.mxu1 %v1991_v7 }
 0x1a2   : > { %3352 = vmatpush3.msra.mxu1 %v4328_v40  ;;  %3348 = vmatprep.mubr.msk.f32.mxu0 %vm3677_vm9, %v3675_v3 }
 0x1a3   : > { %3353 = vmatprep.subr.mxu1 %v3675_v3  ;;  %3349 = vmatmul.mubr.f32.vlgmr.msra.gmra.mxu0 %v4349_v20 }
 0x1a4   : > { %3354 = vmatpush3.msra.mxu1 %v4343_v57  ;;  %3359 = vmatprep.mubr.msk.f32.mxu1 %vm3677_vm9, %v3675_v3 }
 0x1a5   : > { %3355 = vmatprep.subr.mxu1 %v3675_v3 }
 0x1a6   : > { %3356 = vmatpush3.msra.mxu1 %v4357_v58 }
 0x1a7   : > { %3357 = vmatprep.subr.mxu1 %v3675_v3  ;;  %v2498_v3 = vand.u32 4294901760, %v4478_v8 }
 0x1a8   : > { %3358 = vmatpush3.msra.mxu1 %v4371_v52 }
 0x1a9   : > { %3360 = vmatmul.mubr.f32.vlgmr.msra.gmra.mxu1 %v4349_v20  ;;  %v2499_v12 = vsub.f32 %v4478_v8, %v2498_v3 }
 0x1aa   : > { %3372 = vmatprep.mubr.f32.mxu1 %v4475_v46 }
 0x1ab   : > { %v2500_v49 = vand.u32 4294901760, %v2499_v12 }
 0x1ad   : > { %3364 = vmatprep.mubr.f32.mxu0 %v2500_v49 }
 0x21c   : > { %v1287_v13 = vpop.f32.mrf.mxu0 }
 0x21d   : > { %v1288_v4 = vadd.f32 %v1287_v13, %v1179_v62 }
 0x21e   : > { %v1289_v18 = vpop.f32.mrf.mxu0 }
 0x21f   : > { %v1290_v53 = vadd.f32 %v1289_v18, %v1179_v62 }
 0x221   : > { %v1298_v54 = vpop.f32.mrf.mxu0 }
 0x222   : > { %v1299_v19 = vadd.f32 %v1298_v54, %v1184_v17 }
 0x223   : > { %v1300_v60 = vpop.f32.mrf.mxu0 }
 0x224   : > { %v1301_v14 = vadd.f32 %v1300_v60, %v1184_v17 }
 0x226   : > { %v1309_v38 = vpop.f32.mrf.mxu0  ;;  %v1432_v44 = vpop.f32.mrf.mxu1 }
 0x227   : > { %v1433_v15 = vadd.f32 %v1432_v44, %v1288_v4  ;;  %v1310_v29 = vadd.f32 %v1309_v38, %v1189_v10 }
 0x228   : > { %v1311_v55 = vpop.f32.mrf.mxu0  ;;  %v1434_v56 = vpop.f32.mrf.mxu1 }
 0x229   : > { %v1435_v21 = vadd.f32 %v1434_v56, %v1290_v53  ;;  %v1312_v36 = vadd.f32 %v1311_v55, %v1189_v10 }
 0x22a   : > { %v1320_v9 = vpop.f32.mrf.mxu0 }
 0x22b   : > { %v1439_v11 = vpop.f32.mrf.mxu1  ;;  %v1321_v20 = vadd.f32 %v1320_v9, %v1194_v43 }
 0x22c   : > { %v1440_v28 = vadd.f32 %v1439_v11, %v1299_v19  ;;  %v1322_v30 = vpop.f32.mrf.mxu0 }
 0x22d   : > { %v1441_v51 = vpop.f32.mrf.mxu1  ;;  %v1323_v58 = vadd.f32 %v1322_v30, %v1194_v43 }
 0x22e   : > { %v1442_v42 = vadd.f32 %v1441_v51, %v1301_v14  ;;  %v1542_v39 = vpop.f32.mrf.mxu0 }
 0x22f   : > { %v1446_v27 = vpop.f32.mrf.mxu1  ;;  %v1543_v40 = vadd.f32 %v1542_v39, %v1433_v15 }
 0x230   : > { %v1447_v2 = vadd.f32 %v1446_v27, %v1310_v29  ;;  %v1544_v16 = vpop.f32.mrf.mxu0 }
 0x231   : > { %v1448_v50 = vpop.f32.mrf.mxu1  ;;  %v1545_v57 = vadd.f32 %v1544_v16, %v1435_v21 }
 0x232   : > { %v1449_v24 = vadd.f32 %v1448_v50, %v1312_v36 }
 0x233   : > { %v1453_v25 = vpop.f32.mrf.mxu1  ;;  %v1550_v23 = vpop.f32.mrf.mxu0 }
 0x234   : > { %v1454_v22 = vadd.f32 %v1453_v25, %v1321_v20  ;;  %v1551_v26 = vadd.f32 %v1550_v23, %v1440_v28 }
 0x235   : > { %v1455_v52 = vpop.f32.mrf.mxu1  ;;  %v1552_v33 = vpop.f32.mrf.mxu0 }
 0x236   : > { %v1456_v1 = vadd.f32 %v1455_v52, %v1323_v58  ;;  %v1553_v6 = vadd.f32 %v1552_v33, %v1442_v42  ;;  %v1916_v33 = vld [vmem:[%s4621_s7] sm:$0xff] }
 0x237   : > { %v1558_v7 = vpop.f32.mrf.mxu0  ;;  %v1648_v31 = vpop.f32.mrf.mxu1 }
 0x238   : > { %v1559_v34 = vadd.f32 %v1558_v7, %v1447_v2  ;;  %v1649_v35 = vadd.f32 %v1648_v31, %v1543_v40  ;;  %v2410_v7 = vld [vmem:[%s4622_s8 + $0x8] sm:$0xff] }
 0x239   : > { %v1560_v47 = vpop.f32.mrf.mxu0  ;;  %v1650_v37 = vpop.f32.mrf.mxu1 }
 0x23a   : > { %v1561_v59 = vadd.f32 %v1560_v47, %v1449_v24  ;;  %v1651_v5 = vadd.f32 %v1650_v37, %v1545_v57  ;;  %v2422_v37 = vsel %vm2417_vm10, %v2410_v7, 0 }
 0x23b   : > { %v1566_v41 = vpop.f32.mrf.mxu0 }
 0x23c   : > { %v1567_v45 = vadd.f32 %v1566_v41, %v1454_v22  ;;  %v1657_v0 = vpop.f32.mrf.mxu1 }
 0x23d   : > { %v1658_v63 = vadd.f32 %v1657_v0, %v1551_v26  ;;  %v1568_v32 = vpop.f32.mrf.mxu0 }
 0x23e   : > { %v1569_v61 = vadd.f32 %v1568_v32, %v1456_v1  ;;  %v1659_v48 = vpop.f32.mrf.mxu1 }
 0x23f   : > { %v1660_v12 = vadd.f32 %v1659_v48, %v1553_v6  ;;  %v1771_v49 = vpop.f32.mrf.mxu0 }
 0x240   : > { %v1666_v13 = vpop.f32.mrf.mxu1  ;;  %v1772_v18 = vadd.f32 %v1771_v49, %v1649_v35  ;;  %v2411_v35 = vld [vmem:[%s4622_s8 + $0x10] sm:$0xff] }
 0x241   : > { %v1667_v54 = vadd.f32 %v1666_v13, %v1559_v34  ;;  %v1773_v60 = vpop.f32.mrf.mxu0 }
 0x242   : > { %v1668_v62 = vpop.f32.mrf.mxu1  ;;  %v1774_v4 = vadd.f32 %v1773_v60, %v1651_v5  ;;  %v2412_v5 = vld [vmem:[%s4622_s8 + $0x18] sm:$0xff] }
 0x243   : > { %v1669_v38 = vadd.f32 %v1668_v62, %v1561_v59  ;;  %v1778_v44 = vpop.f32.mrf.mxu0  ;;  %v2425_v59 = vsel %vm2417_vm10, %v2411_v35, 0 }
 0x244   : > { %v1675_v53 = vpop.f32.mrf.mxu1  ;;  %v1779_v15 = vadd.f32 %v1778_v44, %v1658_v63  ;;  %v4517_v0 = vand.u32 4294901760, %v2425_v59  ;;  %v2428_v63 = vsel %vm2417_vm10, %v2412_v5, 0 }
 0x245   : > { %v1676_v55 = vadd.f32 %v1675_v53, %v1567_v45  ;;  %v1780_v56 = vpop.f32.mrf.mxu0  ;;  %v4515_v45 = vand.u32 4294901760, %v2422_v37  ;;  %v2526_v13 = vand.u32 4294901760, %v2428_v63 }
 0x246   : > { %v1677_v17 = vpop.f32.mrf.mxu1  ;;  %v1781_v21 = vadd.f32 %v1780_v56, %v1660_v12 }
 0x247   : > { %v1678_v19 = vadd.f32 %v1677_v17, %v1569_v61  ;;  %v1785_v9 = vpop.f32.mrf.mxu0  ;;  %v2507_v49 = vsub.f32 %v2422_v37, %v4515_v45 }
 0x248   : > { %v1786_v10 = vadd.f32 %v1785_v9, %v1667_v54  ;;  %v1872_v11 = vpop.f32.mrf.mxu1  ;;  %v2517_v54 = vsub.f32 %v2425_v59, %v4517_v0 }
 0x249   : > { %v4485_v14 = vadd.f32 %v1872_v11, %v1772_v18  ;;  %v1787_v28 = vpop.f32.mrf.mxu0  ;;  %v2508_v62 = vand.u32 4294901760, %v2507_v49 }
 0x24a   : > { %v1788_v30 = vadd.f32 %v1787_v28, %v1669_v38  ;;  %v1874_v51 = vpop.f32.mrf.mxu1  ;;  %v2518_v44 = vand.u32 4294901760, %v2517_v54 }
 0x24b   : > { %v4487_v29 = vadd.f32 %v1874_v51, %v1774_v4  ;;  %v1792_v42 = vpop.f32.mrf.mxu0  ;;  %v2527_v4 = vsub.f32 %v2428_v63, %v2526_v13  ;;  %v2509_v17 = vsub.f32 %v2507_v49, %v2508_v62 }
 0x24c   : > { %v1793_v39 = vadd.f32 %v1792_v42, %v1676_v55  ;;  %v1879_v27 = vpop.f32.mrf.mxu1  ;;  %v2519_v9 = vsub.f32 %v2517_v54, %v2518_v44 }
 0x24d   : > { %v4489_v40 = vadd.f32 %v1879_v27, %v1779_v15  ;;  %v1794_v36 = vpop.f32.mrf.mxu0  ;;  %v2406_v15 = vstv %s410_s18  ;;  %v2510_v28 = vand.u32 4294901760, %v2509_v17  ;;  %s3217_s18 = sshll.u32 %s394_s11, 6 }
 0x24e   : > { %v1795_v2 = vadd.f32 %v1794_v36, %v1678_v19  ;;  %v1881_v16 = vpop.f32.mrf.mxu1  ;;  %v2520_v51 = vand.u32 4294901760, %v2519_v9  ;;  %s396_s27 = scalar_lea.vmem [#allocation9], %s3217_s18  ;;  %s3600_s18 = sshll.u32 %s3678_s30, 4  ;;  %s3601_s18 = int_to_ptr.vmem [resolvable:$false] %s3600_s18 }
 0x24f   : > { %v4491_v43 = vadd.f32 %v1881_v16, %v1781_v21  ;;  %v1995_v50 = vpop.f32.mrf.mxu0  ;;  %v2528_v21 = vand.u32 4294901760, %v2527_v4  ;;  %s3111_s12 = sshll.u32 %s396_s27, 4  ;;  %s3602_s29 = scalar_lea.vmem %s3601_s18, 2048  ;;  %s4569_s12 = int_to_ptr.vmem [resolvable:$true] %s3111_s12 }
 0x250   : > { %v1886_v57 = vpop.f32.mrf.mxu1  ;;  %v1996_v31 = vadd.f32 %v1995_v50, %v1916_v33  ;;  %v2414_v50 = vld [vmem:[%s4623_s9 + $0x8] sm:$0xff]  ;;  %s3596_s25 = scalar_lea.vmem %s4569_s12, 1024  ;;  %p3603_p8 = scmp.lt.s32.totalorder %s4569_s12, %s3601_s18 }
 0x251   : > { %v4493_v20 = vadd.f32 %v1886_v57, %v1786_v10  ;;  %v3306_v24 = vpop.f32.mrf.mxu0  ;;  %p3597_p9 = scmp.ne.s32.totalorder %s4569_s12, %s3596_s25  ;;  %p3604_p11 = scmp.lt.s32.totalorder %s3602_s29, %s3596_s25 }
 0x252   : > { %v1888_v25 = vpop.f32.mrf.mxu1 }
 0x253   : > { %v4495_v23 = vadd.f32 %v1888_v25, %v1788_v30  ;;  %v2529_v30 = vsub.f32 %v2527_v4, %v2528_v21  ;;  %p3598_p7 = pnand %p3597_p9, %p3774_p5  ;;  %p3605_p13 = por %p3604_p11, %p3603_p8 }
 0x254   : > { %v1893_v58 = vpop.f32.mrf.mxu1 }
 0x255   : > { %v4497_v22 = vadd.f32 %v1893_v58, %v1793_v39  ;;  %v2530_v27 = vand.u32 4294901760, %v2529_v30  ;;  %p3599_p6 = pneg %p3598_p7 }
 0x256   : > { %v1895_v26 = vpop.f32.mrf.mxu1 }
 0x257   : > { %v4499_v52 = vadd.f32 %v1895_v26, %v1795_v2  ;;  %v2416_v26 = vld [vmem:[%s4623_s9 + $0x18] sm:$0xff]  ;;  %p3606_p1 = pnand %p3605_p13, %p3599_p6 }
 0x258   : > { %v2086_v1 = vpop.f32.mrf.mxu1 }
 0x259   : > { %v2166_v6 = vpop.f32.mrf.mxu0  ;;  %v2087_v41 = vadd.f32 %v2086_v1, %v1996_v31 }
 0x25a   : > { %v3317_v34 = vpop.f32.mrf.mxu1 }
 0x25b   : > { %v3328_v47 = vpop.f32.mrf.mxu0  ;;  %v2167_v61 = vadd.f32 %v2166_v6, %v2087_v41 }
 0x25c   : > { %v2415_v47 = vld [vmem:[%s4623_s9 + $0x10] sm:$0xff] }
 0x261   : > { %v2243_v32 = vpop.f32.mrf.mxu1 }
 0x262   : > { %v2244_v18 = vadd.f32 %v2243_v32, %v2167_v61 }
 0x263   : > { %v2326_v48 = vpop.f32.mrf.mxu0  ;;  %v3339_v12 = vpop.f32.mrf.mxu1 }
 0x264   : > { %v2327_v38 = vadd.f32 %v2326_v48, %v2244_v18 }
 0x265   : > { %v3350_v60 = vpop.f32.mrf.mxu0 }
 0x269   : > { %v2401_v53 = vpop.f32.mrf.mxu1 }
 0x26a   : > { %v2402_v55 = vadd.f32 %v2401_v53, %v2327_v38 }
 0x26b   : > { %v3361_v56 = vpop.f32.mrf.mxu1 }
 0x26c   : > { %vm2405_vm11 = vcmp.ge.f32.partialorder %v2402_v55, 0.0  ;;  %v2407_v19 = vmul.f32 %v2406_v15, %v2402_v55 }
 0x26e   : > { %v2408_v10 = vsel %vm2405_vm11, %v2402_v55, %v2407_v19 }
 0x26f   : > { %v2461_v11 = vand.u32 4294901760, %v2408_v10 }
 0x271   : > { %v2568_v42 = vsub.f32 %v2408_v10, %v2461_v11  ;;  %3362 = vmatprep.subr.mxu0 %v2461_v11 }
 0x272   : > { %3363 = vmatpush3.msra.mxu0 %v2461_v11 }
 0x273   : > { %3365 = vmatmul.mubr.f32.vlgmr.msra.gmra.mxu0 %v2510_v28  ;;  %3378 = vmatprep.subr.mxu0 %v2568_v42  ;;  %v2569_v39 = vand.u32 4294901760, %v2568_v42 }
 0x274   : > { %3379 = vmatpush3.msra.mxu0 %v2568_v42  ;;  %3367 = vmatprep.mubr.f32.mxu0 %v2520_v51 }
 0x275   : > { %3394 = vmatprep.subr.mxu0 %v2569_v39  ;;  %v2570_v36 = vsub.f32 %v2568_v42, %v2569_v39 }
 0x277   : > { %3368 = vmatmul.mubr.f32.gmra.mxu0 %v2530_v27  ;;  %v2571_v2 = vand.u32 4294901760, %v2570_v36 }
 0x278   : > { %3380 = vmatprep.mubr.f32.mxu0 %v4478_v8 }
 0x279   : > { %3370 = vmatprep.subr.mxu1 %v2571_v2 }
 0x27a   : > { %3371 = vmatpush3.msra.mxu1 %v2571_v2 }
 0x27b   : > { %3373 = vmatmul.mubr.f32.vlgmr.msra.gmra.mxu1 %v4515_v45  ;;  %3381 = vmatmul.mubr.f32.vlgmr.msra.gmra.mxu0 %v2507_v49 }
 0x27c   : > { %3386 = vmatprep.subr.mxu1 %v2461_v11  ;;  %3395 = vmatpush3.msra.mxu0 %v2569_v39 }
 0x27d   : > { %3387 = vmatpush3.msra.mxu1 %v2461_v11  ;;  %3375 = vmatprep.mubr.f32.mxu1 %v4517_v0 }
 0x27e   : > { %3402 = vmatprep.subr.mxu1 %v2461_v11  ;;  %3383 = vmatprep.mubr.f32.mxu0 %v2517_v54 }
 0x27f   : > { %3376 = vmatmul.mubr.f32.gmra.mxu1 %v2526_v13  ;;  %3384 = vmatmul.mubr.f32.gmra.mxu0 %v2527_v4 }
 0x280   : > { %3388 = vmatprep.mubr.f32.mxu1 %v2498_v3  ;;  %3396 = vmatprep.mubr.f32.mxu0 %v4475_v46 }
 0x283   : > { %3389 = vmatmul.mubr.f32.vlgmr.msra.gmra.mxu1 %v2508_v62  ;;  %3397 = vmatmul.mubr.f32.vlgmr.msra.gmra.mxu0 %v4515_v45 }
 0x284   : > { %3403 = vmatpush3.msra.mxu1 %v2461_v11  ;;  %3391 = vmatprep.mubr.f32.mxu1 %v2518_v44 }
 0x285   : > { %3399 = vmatprep.mubr.f32.mxu0 %v4517_v0 }
 0x287   : > { %3392 = vmatmul.mubr.f32.gmra.mxu1 %v2528_v21  ;;  %3400 = vmatmul.mubr.f32.gmra.mxu0 %v2526_v13 }
 0x288   : > { %3404 = vmatprep.mubr.f32.mxu1 %v4475_v46  ;;  %v2413_v46 = vld [vmem:[%s4623_s9] sm:$0xff] }
 0x28b   : > { %3405 = vmatmul.mubr.f32.vlgmr.msra.gmra.mxu1 %v4515_v45 }
 0x28c   : > { %3407 = vmatprep.mubr.f32.mxu1 %v4517_v0 }
 0x28f   : > { %3408 = vmatmul.mubr.f32.gmra.mxu1 %v2526_v13 }
 0x333   : > { %v3366_v8 = vpop.f32.mrf.mxu0 }
 0x334   : > { %v2513_v58 = vadd.f32 %v3366_v8, %v2414_v50 }
 0x335   : > { %v2502_v3 = vpop.f32.mrf.mxu0 }
 0x336   : > { %v2503_v31 = vadd.f32 %v2502_v3, %v2413_v46 }
 0x337   : > { %v3369_v16 = vpop.f32.mrf.mxu0 }
 0x338   : > { %v2533_v35 = vadd.f32 %v3369_v16, %v2416_v26 }
 0x339   : > { %v2522_v57 = vpop.f32.mrf.mxu0 }
 0x33a   : > { %v2523_v0 = vadd.f32 %v2522_v57, %v2415_v47 }
 0x33b   : > { %v3374_v24 = vpop.f32.mrf.mxu1  ;;  %v3382_v25 = vpop.f32.mrf.mxu0 }
 0x33c   : > { %v2615_v34 = vadd.f32 %v3374_v24, %v2513_v58 }
 0x33d   : > { %v2608_v33 = vpop.f32.mrf.mxu1  ;;  %v2700_v1 = vpop.f32.mrf.mxu0 }
 0x33e   : > { %v2609_v5 = vadd.f32 %v2608_v33, %v2503_v31  ;;  %v2708_v32 = vadd.f32 %v3382_v25, %v2615_v34 }
 0x33f   : > { %v3377_v6 = vpop.f32.mrf.mxu1  ;;  %v3385_v7 = vpop.f32.mrf.mxu0 }
 0x340   : > { %v2627_v63 = vadd.f32 %v3377_v6, %v2533_v35  ;;  %v2701_v49 = vadd.f32 %v2700_v1, %v2609_v5 }
 0x341   : > { %v2620_v37 = vpop.f32.mrf.mxu1  ;;  %v2714_v59 = vpop.f32.mrf.mxu0 }
 0x342   : > { %v2621_v12 = vadd.f32 %v2620_v37, %v2523_v0  ;;  %v2722_v54 = vadd.f32 %v3385_v7, %v2627_v63 }
 0x343   : > { %v3390_v41 = vpop.f32.mrf.mxu1  ;;  %v3398_v45 = vpop.f32.mrf.mxu0 }
 0x344   : > { %v2804_v13 = vadd.f32 %v3390_v41, %v2708_v32  ;;  %v2715_v38 = vadd.f32 %v2714_v59, %v2621_v12 }
 0x345   : > { %v2795_v61 = vpop.f32.mrf.mxu1  ;;  %v2893_v48 = vpop.f32.mrf.mxu0 }
 0x346   : > { %v2796_v60 = vadd.f32 %v2795_v61, %v2701_v49  ;;  %v2900_v53 = vadd.f32 %v3398_v45, %v2804_v13  ;;  %v3521_v61 = vld [vmem:[%s3878_s26 + $0x10] sm:$0xff]  ;;  %v3522_v49 = vld [vmem:[%s3878_s26 + $0x18] sm:$0xff] }
 0x347   : > { %v3393_v18 = vpop.f32.mrf.mxu1  ;;  %v3401_v4 = vpop.f32.mrf.mxu0 }
 0x348   : > { %v2820_v44 = vadd.f32 %v3393_v18, %v2722_v54  ;;  %v2894_v56 = vadd.f32 %v2893_v48, %v2796_v60  ;;  %v3523_v54 = vld [vmem:[%s3878_s26] sm:$0xff] }
 0x349   : > { %v2811_v62 = vpop.f32.mrf.mxu1  ;;  %v2905_v19 = vpop.f32.mrf.mxu0 }
 0x34a   : > { %v2812_v55 = vadd.f32 %v2811_v62, %v2715_v38  ;;  %v2912_v9 = vadd.f32 %v3401_v4, %v2820_v44  ;;  %v3524_v4 = vld [vmem:[%s3878_s26 + $0x8] sm:$0xff] }
 0x34b   : > { %v3406_v15 = vpop.f32.mrf.mxu1 }
 0x34c   : > { %v2990_v17 = vadd.f32 %v3406_v15, %v2900_v53  ;;  %v2906_v28 = vadd.f32 %v2905_v19, %v2812_v55  ;;  %v3525_v53 = vld [vmem:[%s3878_s26 + $0x30] sm:$0xff]  ;;  %v3527_v19 = vld [vmem:[%s3878_s26 + $0x20] sm:$0xff] }
 0x34d   : > { %v2983_v21 = vpop.f32.mrf.mxu1 }
 0x34e   : > { %v2984_v10 = vadd.f32 %v2983_v21, %v2894_v56  ;;  %3012 = vperm.xlu1 %3488, %v2990_v17   ;;  %v3526_v56 = vld [vmem:[%s3878_s26 + $0x38] sm:$0xff] }
 0x34f   : > { %v3409_v11 = vpop.f32.mrf.mxu1 }
 0x350   : > { %v3002_v30 = vadd.f32 %v3409_v11, %v2912_v9  ;;  %3007 = vperm.xlu0 %3487, %v2984_v10   ;;  %v3528_v10 = vld [vmem:[%s3878_s26 + $0x28] sm:$0xff] }
 0x351   : > { %v2995_v51 = vpop.f32.mrf.mxu1 }
 0x352   : > { %v2996_v42 = vadd.f32 %v2995_v51, %v2906_v28  ;;  %3022 = vperm.xlu1 %3488, %v3002_v30  }
 0x354   : > { %3017 = vperm.xlu0 %3487, %v2996_v42  }
 0x3c9   : > { %v3013_v39 = vpop.permute.xlu1 %3012 }
 0x3ca   : > { %v3027_v27 = vadd.f32 %v3013_v39, %v4489_v40  ;;  %v3028_v36 = vadd.f32 %v3013_v39, %v4491_v43 }
 0x3cb   : > { %v3008_v2 = vpop.permute.xlu0 %3007 }
 0x3cc   : > { %v3223_v8 = vmul.f32 -1.442695, %v3027_v27  ;;  %v3224_v3 = vmul.f32 -1.442695, %v3028_v36  ;;  %v3025_v16 = vadd.f32 %v3008_v2, %v4485_v14  ;;  %v3026_v50 = vadd.f32 %v3008_v2, %v4487_v29 }
 0x3cd   : > { %v3023_v57 = vpop.permute.xlu1 %3022 }
 0x3ce   : > { %3489 = vpow2.f32 %v3223_v8  ;;  %v3221_v24 = vmul.f32 -1.442695, %v3025_v16  ;;  %v3222_v25 = vmul.f32 -1.442695, %v3026_v50  ;;  %v3031_v58 = vadd.f32 %v3023_v57, %v4497_v22 }
 0x3cf   : > { %3491 = vpow2.f32 %v3224_v3  ;;  %v3032_v46 = vadd.f32 %v3023_v57, %v4499_v52  ;;  %v3018_v26 = vpop.permute.xlu0 %3017 }
 0x3d0   : > { %3493 = vpow2.f32 %v3221_v24  ;;  %v3227_v40 = vmul.f32 -1.442695, %v3031_v58  ;;  %v3029_v43 = vadd.f32 %v3018_v26, %v4493_v20  ;;  %v3030_v33 = vadd.f32 %v3018_v26, %v4495_v23 }
 0x3d1   : > { %3495 = vpow2.f32 %v3222_v25  ;;  %v3228_v14 = vmul.f32 -1.442695, %v3032_v46 }
 0x3d2   : > { %3497 = vpow2.f32 %v3227_v40  ;;  %v3225_v29 = vmul.f32 -1.442695, %v3029_v43  ;;  %v3226_v1 = vmul.f32 -1.442695, %v3030_v33 }
 0x3d3   : > { %3499 = vpow2.f32 %v3228_v14 }
 0x3d4   : > { %3501 = vpow2.f32 %v3225_v29 }
 0x3d5   : > { %3503 = vpow2.f32 %v3226_v1 }
 0x3db   : > { %v3490_v6 = vpop.eup %3489 }
 0x3dc   : > { %v3492_v22 = vpop.eup %3491  ;;  %v3059_v7 = vadd.f32 1.0, %v3490_v6 }
 0x3dd   : > { %v3494_v31 = vpop.eup %3493  ;;  %v3060_v52 = vadd.f32 1.0, %v3492_v22 }
 0x3de   : > { %v3496_v34 = vpop.eup %3495  ;;  %3505 = vrcp.f32 %v3059_v7  ;;  %v3057_v35 = vadd.f32 1.0, %v3494_v31 }
 0x3df   : > { %v3498_v20 = vpop.eup %3497  ;;  %3507 = vrcp.f32 %v3060_v52  ;;  %v3058_v23 = vadd.f32 1.0, %v3496_v34 }
 0x3e0   : > { %v3500_v47 = vpop.eup %3499  ;;  %3509 = vrcp.f32 %v3057_v35  ;;  %v3063_v37 = vadd.f32 1.0, %v3498_v20 }
 0x3e1   : > { %v3502_v59 = vpop.eup %3501  ;;  %3511 = vrcp.f32 %v3058_v23  ;;  %v3064_v5 = vadd.f32 1.0, %v3500_v47 }
 0x3e2   : > { %v3504_v41 = vpop.eup %3503  ;;  %3513 = vrcp.f32 %v3063_v37  ;;  %v3061_v45 = vadd.f32 1.0, %v3502_v59 }
 0x3e3   : > { %3515 = vrcp.f32 %v3064_v5  ;;  %v3062_v0 = vadd.f32 1.0, %v3504_v41 }
 0x3e4   : > { %3517 = vrcp.f32 %v3061_v45 }
 0x3e5   : > { %3519 = vrcp.f32 %v3062_v0 }
 0x3eb   : > { %v3506_v63 = vpop.eup %3505 }
 0x3ec   : > { %v3508_v32 = vpop.eup %3507  ;;  %v3083_v48 = vmul.f32 %v3521_v61, %v3506_v63 }
 0x3ed   : > { %v3510_v12 = vpop.eup %3509  ;;  %v3084_v13 = vmul.f32 %v3522_v49, %v3508_v32 }
 0x3ee   : > { %v3512_v18 = vpop.eup %3511  ;;  %3091 = vst [vmem:[%s396_s27 + $0x10] sm:$0xff] %v3083_v48  ;;  %v3081_v60 = vmul.f32 %v3523_v54, %v3510_v12 }
 0x3ef   : > { %v3514_v62 = vpop.eup %3513  ;;  %3092 = vst [vmem:[%s396_s27 + $0x18] sm:$0xff] %v3084_v13  ;;  %v3082_v38 = vmul.f32 %v3524_v4, %v3512_v18 }
 0x3f0   : > { %v3516_v44 = vpop.eup %3515  ;;  %3089 = vst [vmem:[%s396_s27] sm:$0xff] %v3081_v60  ;;  %v3087_v15 = vmul.f32 %v3525_v53, %v3514_v62 }
 0x3f1   : > { %v3518_v55 = vpop.eup %3517  ;;  %3090 = vst [vmem:[%s396_s27 + $0x8] sm:$0xff] %v3082_v38  ;;  %v3088_v17 = vmul.f32 %v3526_v56, %v3516_v44 }
 0x3f2   : > { %v3520_v21 = vpop.eup %3519  ;;  %3095 = vst [vmem:[%s396_s27 + $0x30] sm:$0xff] %v3087_v15  ;;  %v3085_v9 = vmul.f32 %v3527_v19, %v3518_v55 }
 0x3f3   : > { %3096 = vst [vmem:[%s396_s27 + $0x38] sm:$0xff] %v3088_v17  ;;  %v3086_v11 = vmul.f32 %v3528_v10, %v3520_v21 }
 0x3f4   : > { %3093 = vst [vmem:[%s396_s27 + $0x20] sm:$0xff] %v3085_v9 }
 0x3f5   : > { %3094 = vst [vmem:[%s396_s27 + $0x28] sm:$0xff] %v3086_v11 }
 0x3f6   : > { %3609 = shalt.err (!%p3606_p1)
}
 0x3f7   : > { %s3610_s26 = scalar_lea.hbm %s4567_s17, 1024  ;;  %s3614_s28 = scalar_lea.hbm %s4624_s10, 2048 }
 0x3f8   : > { %p3611_p0 = scmp.ne.s32.totalorder %s4567_s17, %s3610_s26  ;;  %p3615_p4 = scmp.lt.s32.totalorder %s4567_s17, %s4624_s10 }
 0x3f9   : > { %p3616_p12 = scmp.lt.s32.totalorder %s3614_s28, %s3610_s26 }
 0x3fa   : > { %p3612_p3 = pnand %p3611_p0, %p3774_p5 }
 0x3fb   : > { %p3617_p10 = por %p3616_p12, %p3615_p4 }
 0x3fc   : > { %p3613_p2 = pneg %p3612_p3 }
 0x3fe   : > { %p3618_p9 = pnand %p3617_p10, %p3613_p2 }
 0x400   : > { %3621 = shalt.err (!%p3618_p9)
}
 0x401   : > { %s3679_s25 = smov 256   ;;  %s3680_s18 = smov 16  }
 0x402   : > { %3422 = dma.vmem_to_hbm [thread:$0]  (%p3774_p5), %s4569_s12, 1024, %s4567_s17, %s4574_s21, %s3679_s25, %s3679_s25, %s3680_s18  }
 0x403 PF: > { %p3444_p7 = scmp.ge.s32.totalorder %s3668_s16, 2  ;;  %s3126_s29 = sand.u32 1, %s3656_s13  }
 0x404   : > { %p4636_p6 = scmp.ne.s32.totalorder %s4627_s24, 0  ;;  %s3127_s26 = scalar_lea.sflag [#allocation4], %s3126_s29 }
 0x406   : > { %p3435_p8 = pnand %p3444_p7, %p4636_p6 }
 0x408   : > { %p3436_p11 = pneg %p3435_p8 }
 0x40a   : > { %3651 = dma.done.wait (%p3436_p11), %s3127_s26, 1024  }
 0x40b   : > { %3653 = vsyncadd (%p3436_p11), %s3127_s26, 4294966272  ;;  %p23_p13 = scmp.ge.s32.totalorder %s3761_s19, 4   ;;  %s4637_s13 = smov %s3660_s14 }
 0x40c   : > { %s4638_s14 = smov %s3664_s15  ;;  %s4639_s15 = smov %s3772_s22 }
 0x40d   : > { %s4640_s16 = smov %s3761_s19  ;;  %25 = sbr.rel (!%p23_p13) target bundleno = 6 (0x6), region = 109 }
 0x412   :  { %3132 = vsyncpa [#allocation3], 1 }
 0x413   :  { %3134 = vsyncpa [#allocation3 + $0x1], 1 }
 0x414   :  { %3135 = vsyncpa [#allocation8], 1 }
 0x415   :  { %3136 = vsyncpa [#allocation4], 1 }
 0x416   :  { %3138 = vsyncpa [#allocation4 + $0x1], 1 }
 0x417   :  { %3139 = vsyncpa [#allocation5], 1 }
 0x418   :  { %3141 = vsyncpa [#allocation5 + $0x1], 1 }

</bundles_post_ra>
